<compile_context>
chip_gen: v6e
topology: v6e:2x2x1
jax: 0.10.0
libtpu: 0.0.40
codegen_flags: <defaults>
</compile_context>

<pallas_src>
import functools
import math

import jax
import jax.numpy as jnp
from jax.experimental import pallas as pl
from jax.experimental.pallas import tpu as pltpu

# ----------------------------- configuration -------------------------------
B = 2            # batch
MAXLEN = 8       # data_maxlength (src sequence length)
TRG_LEN = 8      # target sequence length
HID = 32         # decoder.hid_dim
BOTTLE = 4       # bottle_len
N_CAT = 2        # encoder.n_cat
SRC_VOCAB = 16
TRG_VOCAB = 16
SRC_PAD = 0      # src_pad_idx
TRG_PAD = 0      # trg_pad_idx
DTYPE = jnp.float32


# ------------------------------ in-kernel helpers ---------------------------
def _mm_t(x, w):
    """y = x @ w.T   (w stored PyTorch-style as (out_features, in_features))."""
    return jax.lax.dot_general(
        x, w, dimension_numbers=(((1,), (1,)), ((), ())),
        preferred_element_type=jnp.float32)


def _mm(x, w):
    return jnp.dot(x, w, preferred_element_type=jnp.float32)


def _softmax_last(s):
    s = s - jnp.max(s, axis=-1, keepdims=True)
    e = jnp.exp(s)
    return e / jnp.sum(e, axis=-1, keepdims=True)


# ------------------------------ fused kernel --------------------------------
def _seq2seq_kernel(
    # data
    src_ref, trg_ref, noise_ref,
    # encoder params
    enc_emb_ref, enc_w_ref, enc_b_ref, enc_cw_ref, enc_cb_ref,
    # seq2seq (latent / inverse) params, host-repacked
    lat_k_ref, lat_b_ref, inv_wa_ref, inv_wb_ref, inv_b_ref,
    # decoder params
    dec_emb_ref, wqkv_ref, bqkv_ref, wq2_ref, bq2_ref,
    wkv2_ref, bkv2_ref, wo_ref, bo_ref,
    # outputs
    out_ref, attn_ref, latent_ref,
):
    f32 = jnp.float32
    scale = 1.0 / math.sqrt(HID)

    # ------------------------------ encoder ---------------------------------
    src = src_ref[...]                                               # (B, S) int32
    vio = jax.lax.broadcasted_iota(jnp.int32, (B, MAXLEN, SRC_VOCAB), 2)
    src_e = src[:, :, None]
    # one-hot embedding lookup on the MXU; pad positions get an all-zero row
    onehot = ((vio == src_e) & (src_e != SRC_PAD)).astype(f32)       # (B, S, V)
    emb = _mm(onehot.reshape(B * MAXLEN, SRC_VOCAB), enc_emb_ref[...])   # (B*S, H)
    h = jnp.maximum(_mm_t(emb, enc_w_ref[...]) + enc_b_ref[...], 0.0)    # (B*S, H) ReLU fused
    h3 = h.reshape(B, MAXLEN, HID)                                   # leading-dim split only

    # mean pool (for c) and latent; latent's PyTorch .view(-1, hid, maxlen) is folded
    # into lat_k (precomputed host-side), so this is 8 small lane-dense matmuls.
    pooled = jnp.zeros((B, HID), f32)
    lat = jnp.zeros((B, BOTTLE * HID), f32)
    for s in range(MAXLEN):
        hs = h3[:, s, :]                                             # (B, H)
        pooled = pooled + hs
        lat = lat + _mm(hs, lat_k_ref[s])                            # (B, bottle*hid)
    pooled = pooled * (1.0 / MAXLEN)
    lat = lat + lat_b_ref[...]
    c = jnp.tanh(_mm_t(pooled, enc_cw_ref[...]) + enc_cb_ref[...])   # (B, n_cat*H)

    latent_ref[...] = lat.astype(latent_ref.dtype)                   # returned pre-noise

    # noise + inverse.  inverse is split (latent-part | c-part) so no in-kernel concat;
    # its rows were pre-permuted so columns of `inv` are already [l*H + d] (= enc_src
    # after reshape+permute in the reference).
    noise_lat = lat + noise_ref[...]
    inv = (_mm_t(noise_lat, inv_wa_ref[...]) + _mm_t(c, inv_wb_ref[...])
           + inv_b_ref[...])                                         # (B, bottle*H)

    # ------------------------------ decoder ---------------------------------
    trg = trg_ref[...]                                               # (B, T) int32
    vio_t = jax.lax.broadcasted_iota(jnp.int32, (B, TRG_LEN, TRG_VOCAB), 2)
    trg_e = trg[:, :, None]
    onehot_t = (vio_t == trg_e).astype(f32)                          # (B, T, V)
    temb = _mm(onehot_t.reshape(B * TRG_LEN, TRG_VOCAB), dec_emb_ref[...])   # (B*T, H)
    qkv = _mm_t(temb, wqkv_ref[...]) + bqkv_ref[...]                 # (B*T, 3H), fused QKV

    # causal + target-pad mask built in-kernel from iota
    rows = jax.lax.broadcasted_iota(jnp.int32, (TRG_LEN, TRG_LEN), 0)
    cols = jax.lax.broadcasted_iota(jnp.int32, (TRG_LEN, TRG_LEN), 1)
    causal = cols <= rows                                            # (T, T)
    trg_keep = trg != TRG_PAD                                        # (B, T)

    for b in range(B):                                               # B=2, fully unrolled
        r0 = b * TRG_LEN
        q_b = qkv[r0:r0 + TRG_LEN, 0:HID]
        k_b = qkv[r0:r0 + TRG_LEN, HID:2 * HID]
        v_b = qkv[r0:r0 + TRG_LEN, 2 * HID:3 * HID]

        # masked self-attention
        mask_b = causal & trg_keep[b:b + 1, :]                       # (T, T)
        s1 = _mm_t(q_b, k_b) * scale
        s1 = jnp.where(mask_b, s1, -1e10)
        p1 = _softmax_last(s1)
        self_b = _mm(p1, v_b)                                        # (T, H)

        # cross-attention against inverse output (src_mask=None -> no mask)
        q2_b = _mm_t(self_b, wq2_ref[...]) + bq2_ref[...]            # (T, H)
        enc2_b = jnp.concatenate(
            [inv[b:b + 1, l * HID:(l + 1) * HID] for l in range(BOTTLE)], axis=0)  # (Lk, H)
        kv2_b = _mm_t(enc2_b, wkv2_ref[...]) + bkv2_ref[...]         # (Lk, 2H), fused K2V2
        k2_b = kv2_b[:, 0:HID]
        v2_b = kv2_b[:, HID:2 * HID]
        s2 = _mm_t(q2_b, k2_b) * scale                               # (T, Lk)
        p2 = _softmax_last(s2)
        cross_b = _mm(p2, v2_b)                                      # (T, H)

        logits_b = _mm_t(cross_b, wo_ref[...]) + bo_ref[...]         # (T, V)
        out_ref[b] = logits_b.astype(out_ref.dtype)
        attn_ref[b] = p2.astype(attn_ref.dtype)


# ------------------------------ parameters ----------------------------------
def init_params(key):
    def lin(k, out_f, in_f, scale=None):
        kw, kb = jax.random.split(k)
        s = scale if scale is not None else 1.0 / math.sqrt(in_f)
        return (jax.random.normal(kw, (out_f, in_f), DTYPE) * s,
                jax.random.normal(kb, (out_f,), DTYPE) * 0.01)

    keys = jax.random.split(key, 16)
    p = {}
    # --- synthetic encoder ---
    p["enc_emb"] = jax.random.normal(keys[0], (SRC_VOCAB, HID), DTYPE) * 0.1
    p["enc_w"], p["enc_b"] = lin(keys[1], HID, HID)
    p["enc_cw"], p["enc_cb"] = lin(keys[2], N_CAT * HID, HID)
    # --- synthetic decoder ---
    p["dec_emb"] = jax.random.normal(keys[3], (TRG_VOCAB, HID), DTYPE) * 0.1
    p["wq"], p["bq"] = lin(keys[4], HID, HID)
    p["wk"], p["bk"] = lin(keys[5], HID, HID)
    p["wv"], p["bv"] = lin(keys[6], HID, HID)
    p["wq2"], p["bq2"] = lin(keys[7], HID, HID)
    p["wk2"], p["bk2"] = lin(keys[8], HID, HID)
    p["wv2"], p["bv2"] = lin(keys[9], HID, HID)
    p["wo"], p["bo"] = lin(keys[10], TRG_VOCAB, HID)
    # --- Seq2Seq's own layers (shapes exactly as in __init__) ---
    p["lat_w"], p["lat_b"] = lin(keys[11], BOTTLE, MAXLEN)                          # self.latent
    p["inv_w"], p["inv_b"] = lin(keys[12], BOTTLE * HID, (BOTTLE + N_CAT) * HID)    # self.inverse
    p["l1_w"], p["l1_b"] = lin(keys[13], BOTTLE * HID, BOTTLE * HID)                # self.l1 (unused in forward)
    p["l2_w"], p["l2_b"] = lin(keys[14], N_CAT, BOTTLE * HID)                       # self.l2 (unused in forward)
    return p


def _prep_params(p):
    """Host-side weight repacking (pure layout transforms, exact math equivalence)."""
    f32 = lambda a: a.astype(DTYPE)
    prep = {}
    prep["enc_emb"] = f32(p["enc_emb"])
    prep["enc_w"], prep["enc_b"] = f32(p["enc_w"]), f32(p["enc_b"]).reshape(1, HID)
    prep["enc_cw"], prep["enc_cb"] = f32(p["enc_cw"]), f32(p["enc_cb"]).reshape(1, N_CAT * HID)
    prep["dec_emb"] = f32(p["dec_emb"])

    # fused QKV / K2V2 weights
    prep["wqkv"] = jnp.concatenate([f32(p["wq"]), f32(p["wk"]), f32(p["wv"])], axis=0)
    prep["bqkv"] = jnp.concatenate([f32(p["bq"]), f32(p["bk"]), f32(p["bv"])]).reshape(1, 3 * HID)
    prep["wq2"], prep["bq2"] = f32(p["wq2"]), f32(p["bq2"]).reshape(1, HID)
    prep["wkv2"] = jnp.concatenate([f32(p["wk2"]), f32(p["wv2"])], axis=0)
    prep["bkv2"] = jnp.concatenate([f32(p["bk2"]), f32(p["bv2"])]).reshape(1, 2 * HID)
    prep["wo"], prep["bo"] = f32(p["wo"]), f32(p["bo"]).reshape(1, TRG_VOCAB)

    # latent: fold `enc_src.view(-1, hid, maxlen)` into the weight.
    # latent[b, i*BOTTLE+o] = lat_b[o] + sum_{s,hd} h[b,s,hd] * K[s,hd,i*BOTTLE+o]
    # with K = kron(I_hid, lat_w.T) reshaped by the row-major identity s*HID+hd == i*MAXLEN+j.
    kfull = jnp.kron(jnp.eye(HID, dtype=DTYPE), f32(p["lat_w"]).T)          # (S*H, bottle*hid)
    prep["lat_k"] = kfull.reshape(MAXLEN, HID, BOTTLE * HID)
    prep["lat_bias"] = jnp.tile(f32(p["lat_b"]), HID).reshape(1, BOTTLE * HID)

    # inverse: split the (noise_latent | c) input, and permute output rows so that
    # output column l*HID + d equals enc_src[b, l, d] after reshape(-1,hid,bottle).permute(0,2,1).
    n = jnp.arange(BOTTLE * HID)
    old_row = (n % HID) * BOTTLE + (n // HID)
    inv_w = f32(p["inv_w"])[old_row]
    prep["inv_wa"] = inv_w[:, :BOTTLE * HID]                                 # acts on noise_latent
    prep["inv_wb"] = inv_w[:, BOTTLE * HID:]                                 # acts on c
    prep["inv_b"] = f32(p["inv_b"])[old_row].reshape(1, BOTTLE * HID)
    return prep


# ------------------------------ forward -------------------------------------
def seq2seq_forward(p, src, trg, noise_key, use_noise=True):
    prep = _prep_params(p)
    if use_noise:
        noise = jax.random.normal(noise_key, (B, BOTTLE * HID), DTYPE)       # torch.randn_like
    else:
        noise = jnp.zeros((B, BOTTLE * HID), DTYPE)

    inputs = (
        src.astype(jnp.int32), trg.astype(jnp.int32), noise,
        prep["enc_emb"], prep["enc_w"], prep["enc_b"], prep["enc_cw"], prep["enc_cb"],
        prep["lat_k"], prep["lat_bias"], prep["inv_wa"], prep["inv_wb"], prep["inv_b"],
        prep["dec_emb"], prep["wqkv"], prep["bqkv"], prep["wq2"], prep["bq2"],
        prep["wkv2"], prep["bkv2"], prep["wo"], prep["bo"],
    )
    vmem = pl.BlockSpec(memory_space=pltpu.MemorySpace.VMEM)
    out, attn, latent = pl.pallas_call(
        _seq2seq_kernel,
        out_shape=(
            jax.ShapeDtypeStruct((B, TRG_LEN, TRG_VOCAB), DTYPE),
            jax.ShapeDtypeStruct((B, TRG_LEN, BOTTLE), DTYPE),
            jax.ShapeDtypeStruct((B, BOTTLE * HID), DTYPE),
        ),
        in_specs=[vmem] * len(inputs),
        out_specs=(vmem, vmem, vmem),
    )(*inputs)
    return out, attn[:, None], latent                                         # attention: (B,1,T,Lk)


# --------------------------------- driver -----------------------------------
if __name__ == "__main__":
    root = jax.random.PRNGKey(0)
    k_params, k_src, k_trg, k_noise = jax.random.split(root, 4)

    params = init_params(k_params)
    src = jax.random.randint(k_src, (B, MAXLEN), 0, SRC_VOCAB, dtype=jnp.int32)
    trg = jax.random.randint(k_trg, (B, TRG_LEN), 0, TRG_VOCAB, dtype=jnp.int32)
    # force a couple of pad tokens so the masks are non-trivial
    src = src.at[:, -1].set(SRC_PAD)
    trg = trg.at[:, -1].set(TRG_PAD)

    fwd = jax.jit(functools.partial(seq2seq_forward, use_noise=True))
    output, attention, latent = fwd(params, src, trg, k_noise)
    jax.block_until_ready((output, attention, latent))

    assert output.shape == (B, TRG_LEN, TRG_VOCAB)
    assert attention.shape == (B, 1, TRG_LEN, BOTTLE)
    assert latent.shape == (B, BOTTLE * HID)
    assert bool(jnp.all(jnp.isfinite(output)))
    print("KERNEL_OK")
</pallas_src>

<mosaic_0001>
module attributes {stable_mosaic.version = 11 : i64} {
  func.func @_seq2seq_kernel(%arg0: memref<2x8xi32, #tpu.memory_space<vmem>>, %arg1: memref<2x8xi32, #tpu.memory_space<vmem>>, %arg2: memref<2x128xf32, #tpu.memory_space<vmem>>, %arg3: memref<16x32xf32, #tpu.memory_space<vmem>>, %arg4: memref<32x32xf32, #tpu.memory_space<vmem>>, %arg5: memref<1x32xf32, #tpu.memory_space<vmem>>, %arg6: memref<64x32xf32, #tpu.memory_space<vmem>>, %arg7: memref<1x64xf32, #tpu.memory_space<vmem>>, %arg8: memref<8x32x128xf32, #tpu.memory_space<vmem>>, %arg9: memref<1x128xf32, #tpu.memory_space<vmem>>, %arg10: memref<128x128xf32, #tpu.memory_space<vmem>>, %arg11: memref<128x64xf32, #tpu.memory_space<vmem>>, %arg12: memref<1x128xf32, #tpu.memory_space<vmem>>, %arg13: memref<16x32xf32, #tpu.memory_space<vmem>>, %arg14: memref<96x32xf32, #tpu.memory_space<vmem>>, %arg15: memref<1x96xf32, #tpu.memory_space<vmem>>, %arg16: memref<32x32xf32, #tpu.memory_space<vmem>>, %arg17: memref<1x32xf32, #tpu.memory_space<vmem>>, %arg18: memref<64x32xf32, #tpu.memory_space<vmem>>, %arg19: memref<1x64xf32, #tpu.memory_space<vmem>>, %arg20: memref<16x32xf32, #tpu.memory_space<vmem>>, %arg21: memref<1x16xf32, #tpu.memory_space<vmem>>, %arg22: memref<2x8x16xf32, #tpu.memory_space<vmem>>, %arg23: memref<2x8x4xf32, #tpu.memory_space<vmem>>, %arg24: memref<2x128xf32, #tpu.memory_space<vmem>>) attributes {dimension_semantics = [], scalar_prefetch = 0 : i64, scratch_operands = 0 : i64, tpu.core_type = #tpu.core_type<tc>} {
    %c0 = arith.constant 0 : index
    %c0_0 = arith.constant 0 : index
    %0 = vector.load %arg0[%c0, %c0_0] : memref<2x8xi32, #tpu.memory_space<vmem>>, vector<2x8xi32>
    %1 = tpu.iota {dimensions = array<i32: 2>} : vector<2x8x16xi32>
    %2 = vector.shape_cast %0 : vector<2x8xi32> to vector<2x8x1xi32>
    %3 = vector.broadcast %2 : vector<2x8x1xi32> to vector<2x8x16xi32>
    %4 = arith.cmpi eq, %1, %3 : vector<2x8x16xi32>
    %c0_i32 = arith.constant 0 : i32
    %5 = vector.broadcast %c0_i32 : i32 to vector<2x8x1xi32>
    %6 = arith.cmpi ne, %2, %5 : vector<2x8x1xi32>
    %7 = vector.broadcast %6 : vector<2x8x1xi1> to vector<2x8x16xi1>
    %8 = arith.andi %4, %7 : vector<2x8x16xi1>
    %9 = arith.extui %8 : vector<2x8x16xi1> to vector<2x8x16xi32>
    %10 = arith.sitofp %9 : vector<2x8x16xi32> to vector<2x8x16xf32>
    %11 = vector.shape_cast %10 : vector<2x8x16xf32> to vector<16x16xf32>
    %c0_1 = arith.constant 0 : index
    %c0_2 = arith.constant 0 : index
    %12 = vector.load %arg3[%c0_1, %c0_2] : memref<16x32xf32, #tpu.memory_space<vmem>>, vector<16x32xf32>
    %cst = arith.constant dense<0.000000e+00> : vector<16x32xf32>
    %13 = tpu.matmul %11, %12, %cst {dimension_numbers = #tpu.dot_dimension_numbers<[1], [0], [0], [1], [0, 0, 1, 1], [], []>} : vector<16x16xf32>, vector<16x32xf32>, vector<16x32xf32> -> vector<16x32xf32>
    %c0_3 = arith.constant 0 : index
    %c0_4 = arith.constant 0 : index
    %14 = vector.load %arg4[%c0_3, %c0_4] : memref<32x32xf32, #tpu.memory_space<vmem>>, vector<32x32xf32>
    %cst_5 = arith.constant dense<0.000000e+00> : vector<16x32xf32>
    %15 = tpu.matmul %13, %14, %cst_5 {dimension_numbers = #tpu.dot_dimension_numbers<[1], [1], [0], [0], [0, 0, 1, 0], [], []>} : vector<16x32xf32>, vector<32x32xf32>, vector<16x32xf32> -> vector<16x32xf32>
    %c0_6 = arith.constant 0 : index
    %c0_7 = arith.constant 0 : index
    %16 = vector.load %arg5[%c0_6, %c0_7] : memref<1x32xf32, #tpu.memory_space<vmem>>, vector<1x32xf32>
    %17 = vector.broadcast %16 : vector<1x32xf32> to vector<16x32xf32>
    %18 = arith.addf %15, %17 : vector<16x32xf32>
    %cst_8 = arith.constant 0.000000e+00 : f32
    %19 = vector.broadcast %cst_8 : f32 to vector<16x32xf32>
    %20 = arith.maximumf %18, %19 : vector<16x32xf32>
    %21 = vector.shape_cast %20 : vector<16x32xf32> to vector<2x8x32xf32>
    %cst_9 = arith.constant 0.000000e+00 : f32
    %22 = vector.broadcast %cst_9 : f32 to vector<2x32xf32>
    %cst_10 = arith.constant 0.000000e+00 : f32
    %23 = vector.broadcast %cst_10 : f32 to vector<2x128xf32>
    %24 = vector.extract_strided_slice %21 {offsets = [0, 0, 0], sizes = [2, 1, 32], strides = [1, 1, 1]} : vector<2x8x32xf32> to vector<2x1x32xf32>
    %25 = vector.shape_cast %24 : vector<2x1x32xf32> to vector<2x32xf32>
    %26 = arith.addf %22, %25 : vector<2x32xf32>
    %c0_11 = arith.constant 0 : index
    %c0_12 = arith.constant 0 : index
    %c0_13 = arith.constant 0 : index
    %27 = vector.load %arg8[%c0_11, %c0_12, %c0_13] : memref<8x32x128xf32, #tpu.memory_space<vmem>>, vector<1x32x128xf32>
    %28 = vector.shape_cast %27 : vector<1x32x128xf32> to vector<32x128xf32>
    %cst_14 = arith.constant dense<0.000000e+00> : vector<2x128xf32>
    %29 = tpu.matmul %25, %28, %cst_14 {dimension_numbers = #tpu.dot_dimension_numbers<[1], [0], [0], [1], [0, 0, 1, 1], [], []>} : vector<2x32xf32>, vector<32x128xf32>, vector<2x128xf32> -> vector<2x128xf32>
    %30 = arith.addf %23, %29 : vector<2x128xf32>
    %31 = vector.extract_strided_slice %21 {offsets = [0, 1, 0], sizes = [2, 1, 32], strides = [1, 1, 1]} : vector<2x8x32xf32> to vector<2x1x32xf32>
    %32 = vector.shape_cast %31 : vector<2x1x32xf32> to vector<2x32xf32>
    %33 = arith.addf %26, %32 : vector<2x32xf32>
    %c1 = arith.constant 1 : index
    %c0_15 = arith.constant 0 : index
    %c0_16 = arith.constant 0 : index
    %34 = vector.load %arg8[%c1, %c0_15, %c0_16] : memref<8x32x128xf32, #tpu.memory_space<vmem>>, vector<1x32x128xf32>
    %35 = vector.shape_cast %34 : vector<1x32x128xf32> to vector<32x128xf32>
    %cst_17 = arith.constant dense<0.000000e+00> : vector<2x128xf32>
    %36 = tpu.matmul %32, %35, %cst_17 {dimension_numbers = #tpu.dot_dimension_numbers<[1], [0], [0], [1], [0, 0, 1, 1], [], []>} : vector<2x32xf32>, vector<32x128xf32>, vector<2x128xf32> -> vector<2x128xf32>
    %37 = arith.addf %30, %36 : vector<2x128xf32>
    %38 = vector.extract_strided_slice %21 {offsets = [0, 2, 0], sizes = [2, 1, 32], strides = [1, 1, 1]} : vector<2x8x32xf32> to vector<2x1x32xf32>
    %39 = vector.shape_cast %38 : vector<2x1x32xf32> to vector<2x32xf32>
    %40 = arith.addf %33, %39 : vector<2x32xf32>
    %c2 = arith.constant 2 : index
    %c0_18 = arith.constant 0 : index
    %c0_19 = arith.constant 0 : index
    %41 = vector.load %arg8[%c2, %c0_18, %c0_19] : memref<8x32x128xf32, #tpu.memory_space<vmem>>, vector<1x32x128xf32>
    %42 = vector.shape_cast %41 : vector<1x32x128xf32> to vector<32x128xf32>
    %cst_20 = arith.constant dense<0.000000e+00> : vector<2x128xf32>
    %43 = tpu.matmul %39, %42, %cst_20 {dimension_numbers = #tpu.dot_dimension_numbers<[1], [0], [0], [1], [0, 0, 1, 1], [], []>} : vector<2x32xf32>, vector<32x128xf32>, vector<2x128xf32> -> vector<2x128xf32>
    %44 = arith.addf %37, %43 : vector<2x128xf32>
    %45 = vector.extract_strided_slice %21 {offsets = [0, 3, 0], sizes = [2, 1, 32], strides = [1, 1, 1]} : vector<2x8x32xf32> to vector<2x1x32xf32>
    %46 = vector.shape_cast %45 : vector<2x1x32xf32> to vector<2x32xf32>
    %47 = arith.addf %40, %46 : vector<2x32xf32>
    %c3 = arith.constant 3 : index
    %c0_21 = arith.constant 0 : index
    %c0_22 = arith.constant 0 : index
    %48 = vector.load %arg8[%c3, %c0_21, %c0_22] : memref<8x32x128xf32, #tpu.memory_space<vmem>>, vector<1x32x128xf32>
    %49 = vector.shape_cast %48 : vector<1x32x128xf32> to vector<32x128xf32>
    %cst_23 = arith.constant dense<0.000000e+00> : vector<2x128xf32>
    %50 = tpu.matmul %46, %49, %cst_23 {dimension_numbers = #tpu.dot_dimension_numbers<[1], [0], [0], [1], [0, 0, 1, 1], [], []>} : vector<2x32xf32>, vector<32x128xf32>, vector<2x128xf32> -> vector<2x128xf32>
    %51 = arith.addf %44, %50 : vector<2x128xf32>
    %52 = vector.extract_strided_slice %21 {offsets = [0, 4, 0], sizes = [2, 1, 32], strides = [1, 1, 1]} : vector<2x8x32xf32> to vector<2x1x32xf32>
    %53 = vector.shape_cast %52 : vector<2x1x32xf32> to vector<2x32xf32>
    %54 = arith.addf %47, %53 : vector<2x32xf32>
    %c4 = arith.constant 4 : index
    %c0_24 = arith.constant 0 : index
    %c0_25 = arith.constant 0 : index
    %55 = vector.load %arg8[%c4, %c0_24, %c0_25] : memref<8x32x128xf32, #tpu.memory_space<vmem>>, vector<1x32x128xf32>
    %56 = vector.shape_cast %55 : vector<1x32x128xf32> to vector<32x128xf32>
    %cst_26 = arith.constant dense<0.000000e+00> : vector<2x128xf32>
    %57 = tpu.matmul %53, %56, %cst_26 {dimension_numbers = #tpu.dot_dimension_numbers<[1], [0], [0], [1], [0, 0, 1, 1], [], []>} : vector<2x32xf32>, vector<32x128xf32>, vector<2x128xf32> -> vector<2x128xf32>
    %58 = arith.addf %51, %57 : vector<2x128xf32>
    %59 = vector.extract_strided_slice %21 {offsets = [0, 5, 0], sizes = [2, 1, 32], strides = [1, 1, 1]} : vector<2x8x32xf32> to vector<2x1x32xf32>
    %60 = vector.shape_cast %59 : vector<2x1x32xf32> to vector<2x32xf32>
    %61 = arith.addf %54, %60 : vector<2x32xf32>
    %c5 = arith.constant 5 : index
    %c0_27 = arith.constant 0 : index
    %c0_28 = arith.constant 0 : index
    %62 = vector.load %arg8[%c5, %c0_27, %c0_28] : memref<8x32x128xf32, #tpu.memory_space<vmem>>, vector<1x32x128xf32>
    %63 = vector.shape_cast %62 : vector<1x32x128xf32> to vector<32x128xf32>
    %cst_29 = arith.constant dense<0.000000e+00> : vector<2x128xf32>
    %64 = tpu.matmul %60, %63, %cst_29 {dimension_numbers = #tpu.dot_dimension_numbers<[1], [0], [0], [1], [0, 0, 1, 1], [], []>} : vector<2x32xf32>, vector<32x128xf32>, vector<2x128xf32> -> vector<2x128xf32>
    %65 = arith.addf %58, %64 : vector<2x128xf32>
    %66 = vector.extract_strided_slice %21 {offsets = [0, 6, 0], sizes = [2, 1, 32], strides = [1, 1, 1]} : vector<2x8x32xf32> to vector<2x1x32xf32>
    %67 = vector.shape_cast %66 : vector<2x1x32xf32> to vector<2x32xf32>
    %68 = arith.addf %61, %67 : vector<2x32xf32>
    %c6 = arith.constant 6 : index
    %c0_30 = arith.constant 0 : index
    %c0_31 = arith.constant 0 : index
    %69 = vector.load %arg8[%c6, %c0_30, %c0_31] : memref<8x32x128xf32, #tpu.memory_space<vmem>>, vector<1x32x128xf32>
    %70 = vector.shape_cast %69 : vector<1x32x128xf32> to vector<32x128xf32>
    %cst_32 = arith.constant dense<0.000000e+00> : vector<2x128xf32>
    %71 = tpu.matmul %67, %70, %cst_32 {dimension_numbers = #tpu.dot_dimension_numbers<[1], [0], [0], [1], [0, 0, 1, 1], [], []>} : vector<2x32xf32>, vector<32x128xf32>, vector<2x128xf32> -> vector<2x128xf32>
    %72 = arith.addf %65, %71 : vector<2x128xf32>
    %73 = vector.extract_strided_slice %21 {offsets = [0, 7, 0], sizes = [2, 1, 32], strides = [1, 1, 1]} : vector<2x8x32xf32> to vector<2x1x32xf32>
    %74 = vector.shape_cast %73 : vector<2x1x32xf32> to vector<2x32xf32>
    %75 = arith.addf %68, %74 : vector<2x32xf32>
    %c7 = arith.constant 7 : index
    %c0_33 = arith.constant 0 : index
    %c0_34 = arith.constant 0 : index
    %76 = vector.load %arg8[%c7, %c0_33, %c0_34] : memref<8x32x128xf32, #tpu.memory_space<vmem>>, vector<1x32x128xf32>
    %77 = vector.shape_cast %76 : vector<1x32x128xf32> to vector<32x128xf32>
    %cst_35 = arith.constant dense<0.000000e+00> : vector<2x128xf32>
    %78 = tpu.matmul %74, %77, %cst_35 {dimension_numbers = #tpu.dot_dimension_numbers<[1], [0], [0], [1], [0, 0, 1, 1], [], []>} : vector<2x32xf32>, vector<32x128xf32>, vector<2x128xf32> -> vector<2x128xf32>
    %79 = arith.addf %72, %78 : vector<2x128xf32>
    %cst_36 = arith.constant 1.250000e-01 : f32
    %80 = vector.broadcast %cst_36 : f32 to vector<2x32xf32>
    %81 = arith.mulf %75, %80 : vector<2x32xf32>
    %c0_37 = arith.constant 0 : index
    %c0_38 = arith.constant 0 : index
    %82 = vector.load %arg9[%c0_37, %c0_38] : memref<1x128xf32, #tpu.memory_space<vmem>>, vector<1x128xf32>
    %83 = vector.broadcast %82 : vector<1x128xf32> to vector<2x128xf32>
    %84 = arith.addf %79, %83 : vector<2x128xf32>
    %c0_39 = arith.constant 0 : index
    %c0_40 = arith.constant 0 : index
    %85 = vector.load %arg6[%c0_39, %c0_40] : memref<64x32xf32, #tpu.memory_space<vmem>>, vector<64x32xf32>
    %cst_41 = arith.constant dense<0.000000e+00> : vector<2x64xf32>
    %86 = tpu.matmul %81, %85, %cst_41 {dimension_numbers = #tpu.dot_dimension_numbers<[1], [1], [0], [0], [0, 0, 1, 0], [], []>} : vector<2x32xf32>, vector<64x32xf32>, vector<2x64xf32> -> vector<2x64xf32>
    %c0_42 = arith.constant 0 : index
    %c0_43 = arith.constant 0 : index
    %87 = vector.load %arg7[%c0_42, %c0_43] : memref<1x64xf32, #tpu.memory_space<vmem>>, vector<1x64xf32>
    %88 = vector.broadcast %87 : vector<1x64xf32> to vector<2x64xf32>
    %89 = arith.addf %86, %88 : vector<2x64xf32>
    %90 = math.tanh %89 : vector<2x64xf32>
    %c0_44 = arith.constant 0 : index
    %c0_45 = arith.constant 0 : index
    %91 = vector.load %arg24[%c0_44, %c0_45] : memref<2x128xf32, #tpu.memory_space<vmem>>, vector<2x128xf32>
    tpu.vector_store %arg24[%c0_44, %c0_45], %84 {strides = array<i32>} : memref<2x128xf32, #tpu.memory_space<vmem>>, vector<2x128xf32>,
    %c0_46 = arith.constant 0 : index
    %c0_47 = arith.constant 0 : index
    %92 = vector.load %arg2[%c0_46, %c0_47] : memref<2x128xf32, #tpu.memory_space<vmem>>, vector<2x128xf32>
    %93 = arith.addf %84, %92 : vector<2x128xf32>
    %c0_48 = arith.constant 0 : index
    %c0_49 = arith.constant 0 : index
    %94 = vector.load %arg10[%c0_48, %c0_49] : memref<128x128xf32, #tpu.memory_space<vmem>>, vector<128x128xf32>
    %cst_50 = arith.constant dense<0.000000e+00> : vector<2x128xf32>
    %95 = tpu.matmul %93, %94, %cst_50 {dimension_numbers = #tpu.dot_dimension_numbers<[1], [1], [0], [0], [0, 0, 1, 0], [], []>} : vector<2x128xf32>, vector<128x128xf32>, vector<2x128xf32> -> vector<2x128xf32>
    %c0_51 = arith.constant 0 : index
    %c0_52 = arith.constant 0 : index
    %96 = vector.load %arg11[%c0_51, %c0_52] : memref<128x64xf32, #tpu.memory_space<vmem>>, vector<128x64xf32>
    %cst_53 = arith.constant dense<0.000000e+00> : vector<2x128xf32>
    %97 = tpu.matmul %90, %96, %cst_53 {dimension_numbers = #tpu.dot_dimension_numbers<[1], [1], [0], [0], [0, 0, 1, 0], [], []>} : vector<2x64xf32>, vector<128x64xf32>, vector<2x128xf32> -> vector<2x128xf32>
    %98 = arith.addf %95, %97 : vector<2x128xf32>
    %c0_54 = arith.constant 0 : index
    %c0_55 = arith.constant 0 : index
    %99 = vector.load %arg12[%c0_54, %c0_55] : memref<1x128xf32, #tpu.memory_space<vmem>>, vector<1x128xf32>
    %100 = vector.broadcast %99 : vector<1x128xf32> to vector<2x128xf32>
    %101 = arith.addf %98, %100 : vector<2x128xf32>
    %c0_56 = arith.constant 0 : index
    %c0_57 = arith.constant 0 : index
    %102 = vector.load %arg1[%c0_56, %c0_57] : memref<2x8xi32, #tpu.memory_space<vmem>>, vector<2x8xi32>
    %103 = tpu.iota {dimensions = array<i32: 2>} : vector<2x8x16xi32>
    %104 = vector.shape_cast %102 : vector<2x8xi32> to vector<2x8x1xi32>
    %105 = vector.broadcast %104 : vector<2x8x1xi32> to vector<2x8x16xi32>
    %106 = arith.cmpi eq, %103, %105 : vector<2x8x16xi32>
    %107 = arith.extui %106 : vector<2x8x16xi1> to vector<2x8x16xi32>
    %108 = arith.sitofp %107 : vector<2x8x16xi32> to vector<2x8x16xf32>
    %109 = vector.shape_cast %108 : vector<2x8x16xf32> to vector<16x16xf32>
    %c0_58 = arith.constant 0 : index
    %c0_59 = arith.constant 0 : index
    %110 = vector.load %arg13[%c0_58, %c0_59] : memref<16x32xf32, #tpu.memory_space<vmem>>, vector<16x32xf32>
    %cst_60 = arith.constant dense<0.000000e+00> : vector<16x32xf32>
    %111 = tpu.matmul %109, %110, %cst_60 {dimension_numbers = #tpu.dot_dimension_numbers<[1], [0], [0], [1], [0, 0, 1, 1], [], []>} : vector<16x16xf32>, vector<16x32xf32>, vector<16x32xf32> -> vector<16x32xf32>
    %c0_61 = arith.constant 0 : index
    %c0_62 = arith.constant 0 : index
    %112 = vector.load %arg14[%c0_61, %c0_62] : memref<96x32xf32, #tpu.memory_space<vmem>>, vector<96x32xf32>
    %cst_63 = arith.constant dense<0.000000e+00> : vector<16x96xf32>
    %113 = tpu.matmul %111, %112, %cst_63 {dimension_numbers = #tpu.dot_dimension_numbers<[1], [1], [0], [0], [0, 0, 1, 0], [], []>} : vector<16x32xf32>, vector<96x32xf32>, vector<16x96xf32> -> vector<16x96xf32>
    %c0_64 = arith.constant 0 : index
    %c0_65 = arith.constant 0 : index
    %114 = vector.load %arg15[%c0_64, %c0_65] : memref<1x96xf32, #tpu.memory_space<vmem>>, vector<1x96xf32>
    %115 = vector.broadcast %114 : vector<1x96xf32> to vector<16x96xf32>
    %116 = arith.addf %113, %115 : vector<16x96xf32>
    %117 = tpu.iota {dimensions = array<i32: 0>} : vector<8x8xi32>
    %118 = tpu.iota {dimensions = array<i32: 1>} : vector<8x8xi32>
    %119 = arith.cmpi sle, %118, %117 : vector<8x8xi32>
    %c0_i32_66 = arith.constant 0 : i32
    %120 = vector.broadcast %c0_i32_66 : i32 to vector<2x8xi32>
    %121 = arith.cmpi ne, %102, %120 : vector<2x8xi32>
    %122 = vector.extract_strided_slice %116 {offsets = [0, 0], sizes = [8, 32], strides = [1, 1]} : vector<16x96xf32> to vector<8x32xf32>
    %123 = vector.extract_strided_slice %116 {offsets = [0, 32], sizes = [8, 32], strides = [1, 1]} : vector<16x96xf32> to vector<8x32xf32>
    %124 = vector.extract_strided_slice %116 {offsets = [0, 64], sizes = [8, 32], strides = [1, 1]} : vector<16x96xf32> to vector<8x32xf32>
    %125 = vector.extract_strided_slice %121 {offsets = [0, 0], sizes = [1, 8], strides = [1, 1]} : vector<2x8xi1> to vector<1x8xi1>
    %126 = vector.broadcast %125 : vector<1x8xi1> to vector<8x8xi1>
    %127 = arith.andi %119, %126 : vector<8x8xi1>
    %cst_67 = arith.constant dense<0.000000e+00> : vector<8x8xf32>
    %128 = tpu.matmul %122, %123, %cst_67 {dimension_numbers = #tpu.dot_dimension_numbers<[1], [1], [0], [0], [0, 0, 1, 0], [], []>} : vector<8x32xf32>, vector<8x32xf32>, vector<8x8xf32> -> vector<8x8xf32>
    %cst_68 = arith.constant 0.176776692 : f32
    %129 = vector.broadcast %cst_68 : f32 to vector<8x8xf32>
    %130 = arith.mulf %128, %129 : vector<8x8xf32>
    %cst_69 = arith.constant -1.000000e+10 : f32
    %131 = vector.broadcast %cst_69 : f32 to vector<8x8xf32>
    %132 = arith.select %127, %130, %131 : vector<8x8xi1>, vector<8x8xf32>
    %cst_70 = arith.constant dense<0xFF800000> : vector<8xf32>
    %133 = vector.multi_reduction <maximumf>, %132, %cst_70 [1] : vector<8x8xf32> to vector<8xf32>
    %134 = vector.shape_cast %133 : vector<8xf32> to vector<8x1xf32>
    %135 = vector.broadcast %134 : vector<8x1xf32> to vector<8x8xf32>
    %136 = arith.subf %132, %135 : vector<8x8xf32>
    %137 = math.exp %136 : vector<8x8xf32>
    %cst_71 = arith.constant dense<0.000000e+00> : vector<8xf32>
    %138 = vector.multi_reduction <add>, %137, %cst_71 [1] : vector<8x8xf32> to vector<8xf32>
    %139 = vector.shape_cast %138 : vector<8xf32> to vector<8x1xf32>
    %140 = vector.broadcast %139 : vector<8x1xf32> to vector<8x8xf32>
    %141 = arith.divf %137, %140 : vector<8x8xf32>
    %cst_72 = arith.constant dense<0.000000e+00> : vector<8x32xf32>
    %142 = tpu.matmul %141, %124, %cst_72 {dimension_numbers = #tpu.dot_dimension_numbers<[1], [0], [0], [1], [0, 0, 1, 1], [], []>} : vector<8x8xf32>, vector<8x32xf32>, vector<8x32xf32> -> vector<8x32xf32>
    %c0_73 = arith.constant 0 : index
    %c0_74 = arith.constant 0 : index
    %143 = vector.load %arg16[%c0_73, %c0_74] : memref<32x32xf32, #tpu.memory_space<vmem>>, vector<32x32xf32>
    %cst_75 = arith.constant dense<0.000000e+00> : vector<8x32xf32>
    %144 = tpu.matmul %142, %143, %cst_75 {dimension_numbers = #tpu.dot_dimension_numbers<[1], [1], [0], [0], [0, 0, 1, 0], [], []>} : vector<8x32xf32>, vector<32x32xf32>, vector<8x32xf32> -> vector<8x32xf32>
    %c0_76 = arith.constant 0 : index
    %c0_77 = arith.constant 0 : index
    %145 = vector.load %arg17[%c0_76, %c0_77] : memref<1x32xf32, #tpu.memory_space<vmem>>, vector<1x32xf32>
    %146 = vector.broadcast %145 : vector<1x32xf32> to vector<8x32xf32>
    %147 = arith.addf %144, %146 : vector<8x32xf32>
    %148 = vector.extract_strided_slice %101 {offsets = [0, 0], sizes = [1, 32], strides = [1, 1]} : vector<2x128xf32> to vector<1x32xf32>
    %149 = vector.extract_strided_slice %101 {offsets = [0, 32], sizes = [1, 32], strides = [1, 1]} : vector<2x128xf32> to vector<1x32xf32>
    %150 = vector.extract_strided_slice %101 {offsets = [0, 64], sizes = [1, 32], strides = [1, 1]} : vector<2x128xf32> to vector<1x32xf32>
    %151 = vector.extract_strided_slice %101 {offsets = [0, 96], sizes = [1, 32], strides = [1, 1]} : vector<2x128xf32> to vector<1x32xf32>
    %152 = tpu.concatenate %148, %149, %150, %151 in 0 : vector<1x32xf32>, vector<1x32xf32>, vector<1x32xf32>, vector<1x32xf32> -> vector<4x32xf32>
    %c0_78 = arith.constant 0 : index
    %c0_79 = arith.constant 0 : index
    %153 = vector.load %arg18[%c0_78, %c0_79] : memref<64x32xf32, #tpu.memory_space<vmem>>, vector<64x32xf32>
    %cst_80 = arith.constant dense<0.000000e+00> : vector<4x64xf32>
    %154 = tpu.matmul %152, %153, %cst_80 {dimension_numbers = #tpu.dot_dimension_numbers<[1], [1], [0], [0], [0, 0, 1, 0], [], []>} : vector<4x32xf32>, vector<64x32xf32>, vector<4x64xf32> -> vector<4x64xf32>
    %c0_81 = arith.constant 0 : index
    %c0_82 = arith.constant 0 : index
    %155 = vector.load %arg19[%c0_81, %c0_82] : memref<1x64xf32, #tpu.memory_space<vmem>>, vector<1x64xf32>
    %156 = vector.broadcast %155 : vector<1x64xf32> to vector<4x64xf32>
    %157 = arith.addf %154, %156 : vector<4x64xf32>
    %158 = vector.extract_strided_slice %157 {offsets = [0, 0], sizes = [4, 32], strides = [1, 1]} : vector<4x64xf32> to vector<4x32xf32>
    %159 = vector.extract_strided_slice %157 {offsets = [0, 32], sizes = [4, 32], strides = [1, 1]} : vector<4x64xf32> to vector<4x32xf32>
    %cst_83 = arith.constant dense<0.000000e+00> : vector<8x4xf32>
    %160 = tpu.matmul %147, %158, %cst_83 {dimension_numbers = #tpu.dot_dimension_numbers<[1], [1], [0], [0], [0, 0, 1, 0], [], []>} : vector<8x32xf32>, vector<4x32xf32>, vector<8x4xf32> -> vector<8x4xf32>
    %cst_84 = arith.constant 0.176776692 : f32
    %161 = vector.broadcast %cst_84 : f32 to vector<8x4xf32>
    %162 = arith.mulf %160, %161 : vector<8x4xf32>
    %cst_85 = arith.constant dense<0xFF800000> : vector<8xf32>
    %163 = vector.multi_reduction <maximumf>, %162, %cst_85 [1] : vector<8x4xf32> to vector<8xf32>
    %164 = vector.shape_cast %163 : vector<8xf32> to vector<8x1xf32>
    %165 = vector.broadcast %164 : vector<8x1xf32> to vector<8x4xf32>
    %166 = arith.subf %162, %165 : vector<8x4xf32>
    %167 = math.exp %166 : vector<8x4xf32>
    %cst_86 = arith.constant dense<0.000000e+00> : vector<8xf32>
    %168 = vector.multi_reduction <add>, %167, %cst_86 [1] : vector<8x4xf32> to vector<8xf32>
    %169 = vector.shape_cast %168 : vector<8xf32> to vector<8x1xf32>
    %170 = vector.broadcast %169 : vector<8x1xf32> to vector<8x4xf32>
    %171 = arith.divf %167, %170 : vector<8x4xf32>
    %cst_87 = arith.constant dense<0.000000e+00> : vector<8x32xf32>
    %172 = tpu.matmul %171, %159, %cst_87 {dimension_numbers = #tpu.dot_dimension_numbers<[1], [0], [0], [1], [0, 0, 1, 1], [], []>} : vector<8x4xf32>, vector<4x32xf32>, vector<8x32xf32> -> vector<8x32xf32>
    %c0_88 = arith.constant 0 : index
    %c0_89 = arith.constant 0 : index
    %173 = vector.load %arg20[%c0_88, %c0_89] : memref<16x32xf32, #tpu.memory_space<vmem>>, vector<16x32xf32>
    %cst_90 = arith.constant dense<0.000000e+00> : vector<8x16xf32>
    %174 = tpu.matmul %172, %173, %cst_90 {dimension_numbers = #tpu.dot_dimension_numbers<[1], [1], [0], [0], [0, 0, 1, 0], [], []>} : vector<8x32xf32>, vector<16x32xf32>, vector<8x16xf32> -> vector<8x16xf32>
    %c0_91 = arith.constant 0 : index
    %c0_92 = arith.constant 0 : index
    %175 = vector.load %arg21[%c0_91, %c0_92] : memref<1x16xf32, #tpu.memory_space<vmem>>, vector<1x16xf32>
    %176 = vector.broadcast %175 : vector<1x16xf32> to vector<8x16xf32>
    %177 = arith.addf %174, %176 : vector<8x16xf32>
    %c0_93 = arith.constant 0 : index
    %c0_94 = arith.constant 0 : index
    %c0_95 = arith.constant 0 : index
    %178 = vector.load %arg22[%c0_93, %c0_94, %c0_95] : memref<2x8x16xf32, #tpu.memory_space<vmem>>, vector<1x8x16xf32>
    %179 = vector.shape_cast %178 : vector<1x8x16xf32> to vector<8x16xf32>
    %180 = vector.shape_cast %177 : vector<8x16xf32> to vector<1x8x16xf32>
    tpu.vector_store %arg22[%c0_93, %c0_94, %c0_95], %180 {strides = array<i32>} : memref<2x8x16xf32, #tpu.memory_space<vmem>>, vector<1x8x16xf32>,
    %c0_96 = arith.constant 0 : index
    %c0_97 = arith.constant 0 : index
    %c0_98 = arith.constant 0 : index
    %181 = vector.load %arg23[%c0_96, %c0_97, %c0_98] : memref<2x8x4xf32, #tpu.memory_space<vmem>>, vector<1x8x4xf32>
    %182 = vector.shape_cast %181 : vector<1x8x4xf32> to vector<8x4xf32>
    %183 = vector.shape_cast %171 : vector<8x4xf32> to vector<1x8x4xf32>
    tpu.vector_store %arg23[%c0_96, %c0_97, %c0_98], %183 {strides = array<i32>} : memref<2x8x4xf32, #tpu.memory_space<vmem>>, vector<1x8x4xf32>,
    %184 = vector.extract_strided_slice %116 {offsets = [8, 0], sizes = [8, 32], strides = [1, 1]} : vector<16x96xf32> to vector<8x32xf32>
    %185 = vector.extract_strided_slice %116 {offsets = [8, 32], sizes = [8, 32], strides = [1, 1]} : vector<16x96xf32> to vector<8x32xf32>
    %186 = vector.extract_strided_slice %116 {offsets = [8, 64], sizes = [8, 32], strides = [1, 1]} : vector<16x96xf32> to vector<8x32xf32>
    %187 = vector.extract_strided_slice %121 {offsets = [1, 0], sizes = [1, 8], strides = [1, 1]} : vector<2x8xi1> to vector<1x8xi1>
    %188 = vector.broadcast %187 : vector<1x8xi1> to vector<8x8xi1>
    %189 = arith.andi %119, %188 : vector<8x8xi1>
    %cst_99 = arith.constant dense<0.000000e+00> : vector<8x8xf32>
    %190 = tpu.matmul %184, %185, %cst_99 {dimension_numbers = #tpu.dot_dimension_numbers<[1], [1], [0], [0], [0, 0, 1, 0], [], []>} : vector<8x32xf32>, vector<8x32xf32>, vector<8x8xf32> -> vector<8x8xf32>
    %cst_100 = arith.constant 0.176776692 : f32
    %191 = vector.broadcast %cst_100 : f32 to vector<8x8xf32>
    %192 = arith.mulf %190, %191 : vector<8x8xf32>
    %cst_101 = arith.constant -1.000000e+10 : f32
    %193 = vector.broadcast %cst_101 : f32 to vector<8x8xf32>
    %194 = arith.select %189, %192, %193 : vector<8x8xi1>, vector<8x8xf32>
    %cst_102 = arith.constant dense<0xFF800000> : vector<8xf32>
    %195 = vector.multi_reduction <maximumf>, %194, %cst_102 [1] : vector<8x8xf32> to vector<8xf32>
    %196 = vector.shape_cast %195 : vector<8xf32> to vector<8x1xf32>
    %197 = vector.broadcast %196 : vector<8x1xf32> to vector<8x8xf32>
    %198 = arith.subf %194, %197 : vector<8x8xf32>
    %199 = math.exp %198 : vector<8x8xf32>
    %cst_103 = arith.constant dense<0.000000e+00> : vector<8xf32>
    %200 = vector.multi_reduction <add>, %199, %cst_103 [1] : vector<8x8xf32> to vector<8xf32>
    %201 = vector.shape_cast %200 : vector<8xf32> to vector<8x1xf32>
    %202 = vector.broadcast %201 : vector<8x1xf32> to vector<8x8xf32>
    %203 = arith.divf %199, %202 : vector<8x8xf32>
    %cst_104 = arith.constant dense<0.000000e+00> : vector<8x32xf32>
    %204 = tpu.matmul %203, %186, %cst_104 {dimension_numbers = #tpu.dot_dimension_numbers<[1], [0], [0], [1], [0, 0, 1, 1], [], []>} : vector<8x8xf32>, vector<8x32xf32>, vector<8x32xf32> -> vector<8x32xf32>
    %c0_105 = arith.constant 0 : index
    %c0_106 = arith.constant 0 : index
    %205 = vector.load %arg16[%c0_105, %c0_106] : memref<32x32xf32, #tpu.memory_space<vmem>>, vector<32x32xf32>
    %cst_107 = arith.constant dense<0.000000e+00> : vector<8x32xf32>
    %206 = tpu.matmul %204, %205, %cst_107 {dimension_numbers = #tpu.dot_dimension_numbers<[1], [1], [0], [0], [0, 0, 1, 0], [], []>} : vector<8x32xf32>, vector<32x32xf32>, vector<8x32xf32> -> vector<8x32xf32>
    %c0_108 = arith.constant 0 : index
    %c0_109 = arith.constant 0 : index
    %207 = vector.load %arg17[%c0_108, %c0_109] : memref<1x32xf32, #tpu.memory_space<vmem>>, vector<1x32xf32>
    %208 = vector.broadcast %207 : vector<1x32xf32> to vector<8x32xf32>
    %209 = arith.addf %206, %208 : vector<8x32xf32>
    %210 = vector.extract_strided_slice %101 {offsets = [1, 0], sizes = [1, 32], strides = [1, 1]} : vector<2x128xf32> to vector<1x32xf32>
    %211 = vector.extract_strided_slice %101 {offsets = [1, 32], sizes = [1, 32], strides = [1, 1]} : vector<2x128xf32> to vector<1x32xf32>
    %212 = vector.extract_strided_slice %101 {offsets = [1, 64], sizes = [1, 32], strides = [1, 1]} : vector<2x128xf32> to vector<1x32xf32>
    %213 = vector.extract_strided_slice %101 {offsets = [1, 96], sizes = [1, 32], strides = [1, 1]} : vector<2x128xf32> to vector<1x32xf32>
    %214 = tpu.concatenate %210, %211, %212, %213 in 0 : vector<1x32xf32>, vector<1x32xf32>, vector<1x32xf32>, vector<1x32xf32> -> vector<4x32xf32>
    %c0_110 = arith.constant 0 : index
    %c0_111 = arith.constant 0 : index
    %215 = vector.load %arg18[%c0_110, %c0_111] : memref<64x32xf32, #tpu.memory_space<vmem>>, vector<64x32xf32>
    %cst_112 = arith.constant dense<0.000000e+00> : vector<4x64xf32>
    %216 = tpu.matmul %214, %215, %cst_112 {dimension_numbers = #tpu.dot_dimension_numbers<[1], [1], [0], [0], [0, 0, 1, 0], [], []>} : vector<4x32xf32>, vector<64x32xf32>, vector<4x64xf32> -> vector<4x64xf32>
    %c0_113 = arith.constant 0 : index
    %c0_114 = arith.constant 0 : index
    %217 = vector.load %arg19[%c0_113, %c0_114] : memref<1x64xf32, #tpu.memory_space<vmem>>, vector<1x64xf32>
    %218 = vector.broadcast %217 : vector<1x64xf32> to vector<4x64xf32>
    %219 = arith.addf %216, %218 : vector<4x64xf32>
    %220 = vector.extract_strided_slice %219 {offsets = [0, 0], sizes = [4, 32], strides = [1, 1]} : vector<4x64xf32> to vector<4x32xf32>
    %221 = vector.extract_strided_slice %219 {offsets = [0, 32], sizes = [4, 32], strides = [1, 1]} : vector<4x64xf32> to vector<4x32xf32>
    %cst_115 = arith.constant dense<0.000000e+00> : vector<8x4xf32>
    %222 = tpu.matmul %209, %220, %cst_115 {dimension_numbers = #tpu.dot_dimension_numbers<[1], [1], [0], [0], [0, 0, 1, 0], [], []>} : vector<8x32xf32>, vector<4x32xf32>, vector<8x4xf32> -> vector<8x4xf32>
    %cst_116 = arith.constant 0.176776692 : f32
    %223 = vector.broadcast %cst_116 : f32 to vector<8x4xf32>
    %224 = arith.mulf %222, %223 : vector<8x4xf32>
    %cst_117 = arith.constant dense<0xFF800000> : vector<8xf32>
    %225 = vector.multi_reduction <maximumf>, %224, %cst_117 [1] : vector<8x4xf32> to vector<8xf32>
    %226 = vector.shape_cast %225 : vector<8xf32> to vector<8x1xf32>
    %227 = vector.broadcast %226 : vector<8x1xf32> to vector<8x4xf32>
    %228 = arith.subf %224, %227 : vector<8x4xf32>
    %229 = math.exp %228 : vector<8x4xf32>
    %cst_118 = arith.constant dense<0.000000e+00> : vector<8xf32>
    %230 = vector.multi_reduction <add>, %229, %cst_118 [1] : vector<8x4xf32> to vector<8xf32>
    %231 = vector.shape_cast %230 : vector<8xf32> to vector<8x1xf32>
    %232 = vector.broadcast %231 : vector<8x1xf32> to vector<8x4xf32>
    %233 = arith.divf %229, %232 : vector<8x4xf32>
    %cst_119 = arith.constant dense<0.000000e+00> : vector<8x32xf32>
    %234 = tpu.matmul %233, %221, %cst_119 {dimension_numbers = #tpu.dot_dimension_numbers<[1], [0], [0], [1], [0, 0, 1, 1], [], []>} : vector<8x4xf32>, vector<4x32xf32>, vector<8x32xf32> -> vector<8x32xf32>
    %c0_120 = arith.constant 0 : index
    %c0_121 = arith.constant 0 : index
    %235 = vector.load %arg20[%c0_120, %c0_121] : memref<16x32xf32, #tpu.memory_space<vmem>>, vector<16x32xf32>
    %cst_122 = arith.constant dense<0.000000e+00> : vector<8x16xf32>
    %236 = tpu.matmul %234, %235, %cst_122 {dimension_numbers = #tpu.dot_dimension_numbers<[1], [1], [0], [0], [0, 0, 1, 0], [], []>} : vector<8x32xf32>, vector<16x32xf32>, vector<8x16xf32> -> vector<8x16xf32>
    %c0_123 = arith.constant 0 : index
    %c0_124 = arith.constant 0 : index
    %237 = vector.load %arg21[%c0_123, %c0_124] : memref<1x16xf32, #tpu.memory_space<vmem>>, vector<1x16xf32>
    %238 = vector.broadcast %237 : vector<1x16xf32> to vector<8x16xf32>
    %239 = arith.addf %236, %238 : vector<8x16xf32>
    %c1_125 = arith.constant 1 : index
    %c0_126 = arith.constant 0 : index
    %c0_127 = arith.constant 0 : index
    %240 = vector.load %arg22[%c1_125, %c0_126, %c0_127] : memref<2x8x16xf32, #tpu.memory_space<vmem>>, vector<1x8x16xf32>
    %241 = vector.shape_cast %240 : vector<1x8x16xf32> to vector<8x16xf32>
    %242 = vector.shape_cast %239 : vector<8x16xf32> to vector<1x8x16xf32>
    tpu.vector_store %arg22[%c1_125, %c0_126, %c0_127], %242 {strides = array<i32>} : memref<2x8x16xf32, #tpu.memory_space<vmem>>, vector<1x8x16xf32>,
    %c1_128 = arith.constant 1 : index
    %c0_129 = arith.constant 0 : index
    %c0_130 = arith.constant 0 : index
    %243 = vector.load %arg23[%c1_128, %c0_129, %c0_130] : memref<2x8x4xf32, #tpu.memory_space<vmem>>, vector<1x8x4xf32>
    %244 = vector.shape_cast %243 : vector<1x8x4xf32> to vector<8x4xf32>
    %245 = vector.shape_cast %233 : vector<8x4xf32> to vector<1x8x4xf32>
    tpu.vector_store %arg23[%c1_128, %c0_129, %c0_130], %245 {strides = array<i32>} : memref<2x8x4xf32, #tpu.memory_space<vmem>>, vector<1x8x4xf32>,
    return
  }
}

</mosaic_0001>

<bundles_post_ra>
// kernel: tile.8
= control target key start
LH: loop header
LB: loop body
LE: loop exit
PB: predicated region body
PF: predicated region fallthrough
CT: control target
= control target key end

     0   :  { %s40_s0 = inlined_call_operand.vmem [shape: f32[4], index: 0, kind: input, shape index: {}]   ;;  %s41_s1 = inlined_call_operand.vmem [shape: f32[32,4], index: 1, kind: output, shape index: {}]  }
   0x1   :  { %v4_v0 = vld [vmem:[%s40_s0] ss:$0 sm:$0xff] }
   0x2   :  { %5 = vst [vmem:[%s41_s1] sm:$0xff] %v4_v0  ;;  %12 = vst [vmem:[%s41_s1 + $0x8] sm:$0xff] %v4_v0 }
   0x3   :  { %13 = vst [vmem:[%s41_s1 + $0x10] sm:$0xff] %v4_v0  ;;  %14 = vst [vmem:[%s41_s1 + $0x18] sm:$0xff] %v4_v0 }

// kernel: tile.9
= control target key start
LH: loop header
LB: loop body
LE: loop exit
PB: predicated region body
PF: predicated region fallthrough
CT: control target
= control target key end

     0   :  { %s261_s10 = smov 124   ;;  %s262_s11 = smov 116   ;;  %vm3_vm0 = vcmask 31744   ;;  %vm9_vm1 = vcmask 1048544   ;;  %vm15_vm2 = vcmask 1015744   ;;  %vm21_vm3 = vcmask 982944   ;;  %s401_s0 = inlined_call_operand.vmem [shape: f32[32,4], index: 0, kind: input, shape index: {}]   ;;  %s402_s1 = inlined_call_operand.vmem [shape: f32[1,128], index: 1, kind: output, shape index: {}]  }
   0x1   :  { %v199_v0 = vld [vmem:[%s401_s0 + $0x1f] sm:$0x1]   ;;  %v201_v1 = vld [vmem:[%s401_s0 + $0x1d] sm:$0x1]   ;;  %v200_v2 = vld [vmem:[%s401_s0 + $0x1e] sm:$0x1]  }
   0x2   :  { %7 = vrot.lane.b32.xlu0 %v199_v0, %s261_s10  ;;  %19 = vrot.lane.b32.xlu1 %v201_v1, %s262_s11  ;;  %v202_v3 = vld [vmem:[%s401_s0 + $0x1c] sm:$0x1]   ;;  %s263_s16 = smov 120   ;;  %s264_s17 = smov 112   ;;  %v203_v4 = vld [vmem:[%s401_s0 + $0x1b] sm:$0x1]  }
   0x3   :  { %v204_v5 = vld [vmem:[%s401_s0 + $0x1a] sm:$0x1]   ;;  %s265_s22 = smov 108   ;;  %s266_s23 = smov 104   ;;  %v205_v6 = vld [vmem:[%s401_s0 + $0x19] sm:$0x1]  }
   0x4   :  { %v206_v7 = vld [vmem:[%s401_s0 + $0x18] sm:$0x1]   ;;  %s267_s28 = smov 100   ;;  %s268_s29 = smov 96   ;;  %v207_v8 = vld [vmem:[%s401_s0 + $0x17] sm:$0x1]  }
   0x5   :  { %v208_v9 = vld [vmem:[%s401_s0 + $0x16] sm:$0x1]   ;;  %v2_v10 = vld [vmem:[%s401_s0] sm:$0x1]   ;;  %s269_s7 = smov 92   ;;  %s270_s8 = smov 88  }
   0x6   :  { %13 = vrot.lane.b32.xlu0 %v200_v2, %s263_s16  ;;  %25 = vrot.lane.b32.xlu1 %v202_v3, %s264_s17  ;;  %4 = vst.msk [vmem:[#allocation0] sm:$0x1] %vm3_vm0, %v2_v10   ;;  %v209_v11 = vld [vmem:[%s401_s0 + $0x15] sm:$0x1]   ;;  %v210_v12 = vld [vmem:[%s401_s0 + $0x14] sm:$0x1]  }
   0x7   :  { %s271_s13 = smov 84   ;;  %s272_s14 = smov 80   ;;  %v211_v13 = vld [vmem:[%s401_s0 + $0x13] sm:$0x1]   ;;  %v212_v14 = vld [vmem:[%s401_s0 + $0x12] sm:$0x1]  }
   0x8   :  { %s273_s19 = smov 76   ;;  %s274_s20 = smov 72   ;;  %v213_v15 = vld [vmem:[%s401_s0 + $0x11] sm:$0x1]   ;;  %v214_v16 = vld [vmem:[%s401_s0 + $0x10] sm:$0x1]  }
   0x9   :  { %s275_s25 = smov 68   ;;  %s276_s26 = smov 64   ;;  %v215_v17 = vld [vmem:[%s401_s0 + $0xf] sm:$0x1]   ;;  %v216_v18 = vld [vmem:[%s401_s0 + $0xe] sm:$0x1]  }
   0xa   :  { %31 = vrot.lane.b32.xlu0 %v203_v4, %s265_s22  ;;  %37 = vrot.lane.b32.xlu1 %v204_v5, %s266_s23  ;;  %s277_s2 = smov 60   ;;  %s278_s3 = smov 56   ;;  %v217_v19 = vld [vmem:[%s401_s0 + $0xd] sm:$0x1]   ;;  %v218_v20 = vld [vmem:[%s401_s0 + $0xc] sm:$0x1]  }
   0xb   :  { %s280_s9 = smov 48   ;;  %v219_v21 = vld [vmem:[%s401_s0 + $0xb] sm:$0x1]   ;;  %v220_v22 = vld [vmem:[%s401_s0 + $0xa] sm:$0x1]   ;;  %s282_s15 = smov 40  }
   0xc   :  { %v221_v23 = vld [vmem:[%s401_s0 + $0x9] sm:$0x1]   ;;  %v222_v24 = vld [vmem:[%s401_s0 + $0x8] sm:$0x1]   ;;  %s284_s21 = smov 32   ;;  %s286_s27 = smov 24  }
   0xd   :  { %v223_v25 = vld [vmem:[%s401_s0 + $0x7] sm:$0x1]   ;;  %v224_v26 = vld [vmem:[%s401_s0 + $0x6] sm:$0x1]   ;;  %v225_v27 = vld [vmem:[%s401_s0 + $0x5] sm:$0x1]  }
   0xe   :  { %43 = vrot.lane.b32.xlu0 %v205_v6, %s267_s28  ;;  %49 = vrot.lane.b32.xlu1 %v206_v7, %s268_s29  ;;  %v226_v28 = vld [vmem:[%s401_s0 + $0x4] sm:$0x1]   ;;  %s288_s4 = smov 16   ;;  %v227_v29 = vld [vmem:[%s401_s0 + $0x3] sm:$0x1]   ;;  %s290_s10 = smov 8  }
   0xf   :  { %v228_v30 = vld [vmem:[%s401_s0 + $0x2] sm:$0x1]   ;;  %v229_v31 = vld [vmem:[%s401_s0 + $0x1] sm:$0x1]   ;;  %s291_s0 = smov 4   ;;  %vm27_vm4 = vcmask 950144  }
  0x10   :  { %vm33_vm5 = vcmask 917344   ;;  %vm39_vm6 = vcmask 884544   ;;  %vm45_vm7 = vcmask 851744   ;;  %vm51_vm8 = vcmask 818944  }
  0x11   :  { %vm57_vm9 = vcmask 786144   ;;  %vm63_vm10 = vcmask 753344   ;;  %vm69_vm11 = vcmask 720544   ;;  %vm75_vm12 = vcmask 687744  }
  0x12   :  { %55 = vrot.lane.b32.xlu0 %v207_v8, %s269_s7  ;;  %61 = vrot.lane.b32.xlu1 %v208_v9, %s270_s8  ;;  %s279_s8 = smov 52   ;;  %vm81_vm13 = vcmask 654944   ;;  %vm87_vm14 = vcmask 622144   ;;  %vm93_vm15 = vcmask 589344   ;;  %vm99_vm0 = vcmask 556544  }
  0x16   :  { %67 = vrot.lane.b32.xlu0 %v209_v11, %s271_s13  ;;  %73 = vrot.lane.b32.xlu1 %v210_v12, %s272_s14  ;;  %s281_s14 = smov 44  }
  0x1a   :  { %79 = vrot.lane.b32.xlu0 %v211_v13, %s273_s19  ;;  %85 = vrot.lane.b32.xlu1 %v212_v14, %s274_s20  ;;  %s283_s20 = smov 36  }
  0x1e   :  { %91 = vrot.lane.b32.xlu0 %v213_v15, %s275_s25  ;;  %97 = vrot.lane.b32.xlu1 %v214_v16, %s276_s26  ;;  %s285_s26 = smov 28  }
  0x22   :  { %103 = vrot.lane.b32.xlu0 %v215_v17, %s277_s2  ;;  %109 = vrot.lane.b32.xlu1 %v216_v18, %s278_s3  ;;  %s287_s3 = smov 20  }
  0x26   :  { %115 = vrot.lane.b32.xlu0 %v217_v19, %s279_s8  ;;  %121 = vrot.lane.b32.xlu1 %v218_v20, %s280_s9  ;;  %s289_s9 = smov 12  }
  0x2a   :  { %127 = vrot.lane.b32.xlu0 %v219_v21, %s281_s14  ;;  %133 = vrot.lane.b32.xlu1 %v220_v22, %s282_s15 }
  0x2e   :  { %139 = vrot.lane.b32.xlu0 %v221_v23, %s283_s20  ;;  %145 = vrot.lane.b32.xlu1 %v222_v24, %s284_s21 }
  0x32   :  { %151 = vrot.lane.b32.xlu0 %v223_v25, %s285_s26  ;;  %157 = vrot.lane.b32.xlu1 %v224_v26, %s286_s27 }
  0x36   :  { %163 = vrot.lane.b32.xlu0 %v225_v27, %s287_s3  ;;  %169 = vrot.lane.b32.xlu1 %v226_v28, %s288_s4 }
  0x3a   :  { %175 = vrot.lane.b32.xlu0 %v227_v29, %s289_s9  ;;  %181 = vrot.lane.b32.xlu1 %v228_v30, %s290_s10 }
  0x3e   :  { %187 = vrot.lane.b32.xlu0 %v229_v31, %s291_s0 }
  0x74   :  { %v8_v32 = vpop.permute.xlu0 %7   ;;  %v20_v33 = vpop.permute.xlu1 %19  }
  0x75   :  { %10 = vst.msk [vmem:[#allocation0] sm:$0x1] %vm9_vm1, %v8_v32   ;;  %vm105_vm1 = vcmask 523744  }
  0x78   :  { %v14_v34 = vpop.permute.xlu0 %13   ;;  %v26_v35 = vpop.permute.xlu1 %25  }
  0x79   :  { %16 = vst.msk [vmem:[#allocation0] sm:$0x1] %vm15_vm2, %v14_v34   ;;  %vm111_vm2 = vcmask 490944  }
  0x7a   :  { %22 = vst.msk [vmem:[#allocation0] sm:$0x1] %vm21_vm3, %v20_v33   ;;  %vm117_vm3 = vcmask 458144  }
  0x7b   :  { %28 = vst.msk [vmem:[#allocation0] sm:$0x1] %vm27_vm4, %v26_v35   ;;  %vm123_vm4 = vcmask 425344  }
  0x7c   :  { %v32_v36 = vpop.permute.xlu0 %31   ;;  %v38_v37 = vpop.permute.xlu1 %37  }
  0x7d   :  { %34 = vst.msk [vmem:[#allocation0] sm:$0x1] %vm33_vm5, %v32_v36   ;;  %vm129_vm5 = vcmask 392544  }
  0x7e   :  { %40 = vst.msk [vmem:[#allocation0] sm:$0x1] %vm39_vm6, %v38_v37   ;;  %vm135_vm6 = vcmask 359744  }
  0x80   :  { %v44_v38 = vpop.permute.xlu0 %43   ;;  %v50_v39 = vpop.permute.xlu1 %49  }
  0x81   :  { %46 = vst.msk [vmem:[#allocation0] sm:$0x1] %vm45_vm7, %v44_v38   ;;  %vm141_vm7 = vcmask 326944  }
  0x82   :  { %52 = vst.msk [vmem:[#allocation0] sm:$0x1] %vm51_vm8, %v50_v39   ;;  %vm147_vm8 = vcmask 294144  }
  0x84   :  { %v56_v40 = vpop.permute.xlu0 %55   ;;  %v62_v41 = vpop.permute.xlu1 %61  }
  0x85   :  { %58 = vst.msk [vmem:[#allocation0] sm:$0x1] %vm57_vm9, %v56_v40   ;;  %vm153_vm9 = vcmask 261344  }
  0x86   :  { %64 = vst.msk [vmem:[#allocation0] sm:$0x1] %vm63_vm10, %v62_v41   ;;  %vm159_vm10 = vcmask 228544  }
  0x88   :  { %v68_v42 = vpop.permute.xlu0 %67   ;;  %v74_v43 = vpop.permute.xlu1 %73  }
  0x89   :  { %70 = vst.msk [vmem:[#allocation0] sm:$0x1] %vm69_vm11, %v68_v42   ;;  %vm165_vm11 = vcmask 195744  }
  0x8a   :  { %76 = vst.msk [vmem:[#allocation0] sm:$0x1] %vm75_vm12, %v74_v43   ;;  %vm171_vm12 = vcmask 162944  }
  0x8c   :  { %v80_v44 = vpop.permute.xlu0 %79   ;;  %v86_v45 = vpop.permute.xlu1 %85  }
  0x8d   :  { %82 = vst.msk [vmem:[#allocation0] sm:$0x1] %vm81_vm13, %v80_v44   ;;  %vm177_vm13 = vcmask 130144  }
  0x8e   :  { %88 = vst.msk [vmem:[#allocation0] sm:$0x1] %vm87_vm14, %v86_v45   ;;  %vm183_vm14 = vcmask 97344  }
  0x90   :  { %v92_v46 = vpop.permute.xlu0 %91   ;;  %v98_v47 = vpop.permute.xlu1 %97  }
  0x91   :  { %94 = vst.msk [vmem:[#allocation0] sm:$0x1] %vm93_vm15, %v92_v46   ;;  %vm189_vm15 = vcmask 64544  }
  0x92   :  { %100 = vst.msk [vmem:[#allocation0] sm:$0x1] %vm99_vm0, %v98_v47  }
  0x94   :  { %v104_v48 = vpop.permute.xlu0 %103   ;;  %v110_v49 = vpop.permute.xlu1 %109  }
  0x95   :  { %106 = vst.msk [vmem:[#allocation0] sm:$0x1] %vm105_vm1, %v104_v48  }
  0x96   :  { %112 = vst.msk [vmem:[#allocation0] sm:$0x1] %vm111_vm2, %v110_v49  }
  0x98   :  { %v116_v50 = vpop.permute.xlu0 %115   ;;  %v122_v51 = vpop.permute.xlu1 %121  }
  0x99   :  { %118 = vst.msk [vmem:[#allocation0] sm:$0x1] %vm117_vm3, %v116_v50  }
  0x9a   :  { %124 = vst.msk [vmem:[#allocation0] sm:$0x1] %vm123_vm4, %v122_v51  }
  0x9c   :  { %v128_v52 = vpop.permute.xlu0 %127   ;;  %v134_v53 = vpop.permute.xlu1 %133  }
  0x9d   :  { %130 = vst.msk [vmem:[#allocation0] sm:$0x1] %vm129_vm5, %v128_v52  }
  0x9e   :  { %136 = vst.msk [vmem:[#allocation0] sm:$0x1] %vm135_vm6, %v134_v53  }
  0xa0   :  { %v140_v54 = vpop.permute.xlu0 %139   ;;  %v146_v55 = vpop.permute.xlu1 %145  }
  0xa1   :  { %142 = vst.msk [vmem:[#allocation0] sm:$0x1] %vm141_vm7, %v140_v54  }
  0xa2   :  { %148 = vst.msk [vmem:[#allocation0] sm:$0x1] %vm147_vm8, %v146_v55  }
  0xa4   :  { %v152_v56 = vpop.permute.xlu0 %151   ;;  %v158_v57 = vpop.permute.xlu1 %157  }
  0xa5   :  { %154 = vst.msk [vmem:[#allocation0] sm:$0x1] %vm153_vm9, %v152_v56  }
  0xa6   :  { %160 = vst.msk [vmem:[#allocation0] sm:$0x1] %vm159_vm10, %v158_v57  }
  0xa8   :  { %v164_v58 = vpop.permute.xlu0 %163   ;;  %v170_v59 = vpop.permute.xlu1 %169  }
  0xa9   :  { %166 = vst.msk [vmem:[#allocation0] sm:$0x1] %vm165_vm11, %v164_v58  }
  0xaa   :  { %172 = vst.msk [vmem:[#allocation0] sm:$0x1] %vm171_vm12, %v170_v59  }
  0xac   :  { %v176_v60 = vpop.permute.xlu0 %175   ;;  %v182_v61 = vpop.permute.xlu1 %181  }
  0xad   :  { %178 = vst.msk [vmem:[#allocation0] sm:$0x1] %vm177_vm13, %v176_v60  }
  0xae   :  { %184 = vst.msk [vmem:[#allocation0] sm:$0x1] %vm183_vm14, %v182_v61  }
  0xb0   :  { %v188_v62 = vpop.permute.xlu0 %187  }
  0xb1   :  { %190 = vst.msk [vmem:[#allocation0] sm:$0x1] %vm189_vm15, %v188_v62  }
  0xb8   :  { %v195_v63 = vld [vmem:[#allocation0] sm:$0x1] }
  0xb9   :  { %198 = vst [vmem:[%s402_s1] sm:$0x1] %v195_v63 }

// kernel: seq2seq_forward.1
= control target key start
LH: loop header
LB: loop body
LE: loop exit
PB: predicated region body
PF: predicated region fallthrough
CT: control target
= control target key end

     0   :  { %s4677_s0 = inlined_call_operand.vmem [shape: s32[2,8], index: 0, kind: input, shape index: {}]   ;;  %s4678_s1 = inlined_call_operand.vmem [shape: s32[2,8], index: 1, kind: input, shape index: {}]   ;;  %s4679_s2 = inlined_call_operand.vmem [shape: f32[2,128], index: 2, kind: input, shape index: {}]   ;;  %s4680_s3 = inlined_call_operand.vmem [shape: f32[16,32], index: 3, kind: input, shape index: {}]   ;;  %s4681_s4 = inlined_call_operand.vmem [shape: f32[32,32], index: 4, kind: input, shape index: {}]   ;;  %s4682_s5 = inlined_call_operand.vmem [shape: f32[1,32], index: 5, kind: input, shape index: {}]   ;;  %s4683_s6 = inlined_call_operand.vmem [shape: f32[64,32], index: 6, kind: input, shape index: {}]   ;;  %s4684_s7 = inlined_call_operand.vmem [shape: f32[1,64], index: 7, kind: input, shape index: {}]   ;;  %s4685_s8 = inlined_call_operand.vmem [shape: f32[8,32,128], index: 8, kind: input, shape index: {}]   ;;  %s4686_s9 = inlined_call_operand.vmem [shape: f32[1,128], index: 9, kind: input, shape index: {}]   ;;  %s4687_s10 = inlined_call_operand.vmem [shape: f32[128,128], index: 10, kind: input, shape index: {}]   ;;  %s4688_s11 = inlined_call_operand.vmem [shape: f32[128,64], index: 11, kind: input, shape index: {}]   ;;  %s4689_s12 = inlined_call_operand.vmem [shape: f32[1,128], index: 12, kind: input, shape index: {}]   ;;  %s4690_s13 = inlined_call_operand.vmem [shape: f32[16,32], index: 13, kind: input, shape index: {}]   ;;  %s4691_s14 = inlined_call_operand.vmem [shape: f32[96,32], index: 14, kind: input, shape index: {}]   ;;  %s4692_s15 = inlined_call_operand.vmem [shape: f32[1,96], index: 15, kind: input, shape index: {}]   ;;  %s4693_s16 = inlined_call_operand.vmem [shape: f32[32,32], index: 16, kind: input, shape index: {}]   ;;  %s4694_s17 = inlined_call_operand.vmem [shape: f32[1,32], index: 17, kind: input, shape index: {}]   ;;  %s4695_s18 = inlined_call_operand.vmem [shape: f32[64,32], index: 18, kind: input, shape index: {}]   ;;  %s4696_s19 = inlined_call_operand.vmem [shape: f32[1,64], index: 19, kind: input, shape index: {}]   ;;  %s4697_s20 = inlined_call_operand.vmem [shape: f32[16,32], index: 20, kind: input, shape index: {}]   ;;  %s4698_s21 = inlined_call_operand.vmem [shape: f32[1,16], index: 21, kind: input, shape index: {}]   ;;  %s4699_s22 = inlined_call_operand.hbm [shape: f32[2,8,16], index: 22, kind: output, shape index: {0}]   ;;  %s4700_s23 = inlined_call_operand.vmem [shape: f32[2,8,4], index: 23, kind: output, shape index: {1}]   ;;  %s4701_s24 = inlined_call_operand.hbm [shape: f32[2,128], index: 24, kind: output, shape index: {2}]  }
   0x1   :  { %4706 = sst [smem:[#allocation8_spill]] %s4677_s0 }
   0x2   :  { %4707 = sst [smem:[#allocation9_spill]] %s4678_s1 }
   0x3   :  { %4708 = sst [smem:[#allocation10_spill]] %s4679_s2 }
   0x4   :  { %4709 = sst [smem:[#allocation11_spill]] %s4680_s3 }
   0x5   :  { %4710 = sst [smem:[#allocation12_spill]] %s4681_s4 }
   0x6   :  { %4711 = sst [smem:[#allocation13_spill]] %s4682_s5 }
   0x7   :  { %4712 = sst [smem:[#allocation14_spill]] %s4683_s6 }
   0x8   :  { %4713 = sst [smem:[#allocation15_spill]] %s4684_s7 }
   0x9   :  { %4714 = sst [smem:[#allocation16_spill]] %s4685_s8 }
   0xa   :  { %30 = vsyncpa [#allocation3], 0  ;;  %v77_v0 = vlaneseq  ;;  %s4715_s27 = sld [smem:[#allocation11_spill]]  ;;  %v3669_v3 = vmov 0.0  }
   0xb   :  { %3272 = vmatprep.subr.mxu0 %v3669_v3 }
  0x10   :  { %v108_v1 = vld [vmem:[%s4715_s27 + $0x8] sm:$0xff]  ;;  %v107_v2 = vld [vmem:[%s4715_s27] sm:$0xff] }
  0x11   :  { %3254 = vmatprep.subr.mxu1 %v108_v1 }
  0x12   :  { %31 = vsyncpa [#allocation5], 0  ;;  %v3811_v4 = vshrl.u32 %v77_v0, 7  ;;  %3255 = vmatpush3.msra.mxu1 %v108_v1  ;;  %s4716_s0 = sld [smem:[#allocation12_spill]]  ;;  %vm202_vm0 = vcmask 261120   ;;  %v3826_v11 = vand.u32 127, %v77_v0 }
  0x13   :  { %s4717_s3 = sld [smem:[#allocation8_spill]]  ;;  %3256 = vmatprep.subr.mxu1 %v107_v2  ;;  %vm109_vm3 = vcmask 130048   ;;  %vm3670_vm8 = vmmov 0   ;;  %vm317_vm9 = vcmask 1041409   ;;  %vm1135_vm10 = vcmask 523264  }
  0x14   :  { %v81_v7 = vsub.s32 0, %v3811_v4  ;;  %v88_v8 = vsub.s32 1, %v3811_v4  ;;  %3257 = vmatpush3.msra.mxu1 %v107_v2  ;;  %s4718_s6 = sld [smem:[#allocation16_spill]]  ;;  %3280 = vmatprep.mubr.msk.f32.mxu0 %vm3670_vm8, %v3669_v3  ;;  %vm1585_vm14 = vcmask 1042434   ;;  %vm1588_vm15 = vcmask 1043459  }
  0x15   :  { %s4721_s2 = sld [smem:[#allocation14_spill]] }
  0x16   :  { %s4722_s1 = sld [smem:[#allocation10_spill]] }
  0x17   :  { %s4723_s26 = sld [smem:[#allocation15_spill]] }
  0x18   :  { %v194_v5 = vld [vmem:[%s4716_s0 + $0x18] sm:$0xff]  ;;  %v193_v16 = vld [vmem:[%s4716_s0 + $0x10] sm:$0xff]  ;;  %v192_v17 = vld [vmem:[%s4716_s0 + $0x8] sm:$0xff] }
  0x19   :  { %v76_v6 = vld [vmem:[%s4717_s3] sm:$0x3]  ;;  %3261 = vmatprep.subr.msk.mxu1 %vm202_vm0, %v194_v5  ;;  %s4720_s3 = sld [smem:[#allocation13_spill]] }
  0x1a   :  { %v82_v9 = vrot.slane %v76_v6, %v81_v7  ;;  %v89_v10 = vrot.slane %v76_v6, %v88_v8  ;;  %v191_v18 = vld [vmem:[%s4716_s0] sm:$0xff]  ;;  %v2957_v21 = vld [vmem:[%s4718_s6 + $0x38] sm:$0xff]  ;;  %v2956_v23 = vld [vmem:[%s4718_s6 + $0x30] sm:$0xff]  ;;  %s4719_s0 = sld [smem:[#allocation9_spill]] }
  0x1b   :  { %v2963_v22 = vld [vmem:[%s4718_s6 + $0x58] sm:$0xff]  ;;  %3273 = vmatpush3.msra.mxu0 %v2957_v21  ;;  %v2962_v24 = vld [vmem:[%s4718_s6 + $0x50] sm:$0xff]  ;;  %v2955_v25 = vld [vmem:[%s4718_s6 + $0x28] sm:$0xff] }
  0x1c   :  { %84 = vbcast.lane.b32.xlu0 %v82_v9, 256  ;;  %3274 = vmatprep.subr.mxu0 %v3669_v3  ;;  %v2961_v26 = vld [vmem:[%s4718_s6 + $0x48] sm:$0xff]  ;;  %v2954_v27 = vld [vmem:[%s4718_s6 + $0x20] sm:$0xff]  ;;  %v303_v42 = vld [vmem:[%s4718_s6 + $0x18] sm:$0xff] }
  0x1d   :  { %3275 = vmatpush3.msra.mxu0 %v2956_v23  ;;  %v2960_v28 = vld [vmem:[%s4718_s6 + $0x40] sm:$0xff]  ;;  %v2973_v43 = vld [vmem:[%s4718_s6 + $0x98] sm:$0xff]  ;;  %v302_v46 = vld [vmem:[%s4718_s6 + $0x10] sm:$0xff] }
  0x1e   :  { %3276 = vmatprep.subr.mxu0 %v3669_v3  ;;  %v2972_v47 = vld [vmem:[%s4718_s6 + $0x90] sm:$0xff]  ;;  %v301_v48 = vld [vmem:[%s4718_s6 + $0x8] sm:$0xff]  ;;  %v300_v50 = vld [vmem:[%s4718_s6] sm:$0xff] }
  0x1f   :  { %3277 = vmatpush3.msra.mxu0 %v2955_v25  ;;  %v2947_v32 = vld [vmem:[%s4720_s3] ss:$0 sm:$0xff]  ;;  %v2971_v49 = vld [vmem:[%s4718_s6 + $0x88] sm:$0xff]  ;;  %v2968_v56 = vld [vmem:[%s4718_s6 + $0x78] sm:$0xff]  ;;  %s3673_s3 = smov 64  }
  0x20   :  { %91 = vbcast.lane.b32.xlu0 %v89_v10, 256  ;;  %3278 = vmatprep.subr.mxu0 %v3669_v3  ;;  %v3892_v29 = vld [vmem:[%s4719_s0] sm:$0x3]  ;;  %v2983_v57 = vld [vmem:[%s4718_s6 + $0xd8] sm:$0xff]  ;;  %v2967_v59 = vld [vmem:[%s4718_s6 + $0x70] sm:$0xff] }
  0x21   :  { %3279 = vmatpush3.msra.mxu0 %v2954_v27  ;;  %v1339_v30 = vrot.slane %v3892_v29, %v81_v7  ;;  %v1346_v31 = vrot.slane %v3892_v29, %v88_v8  ;;  %v2970_v52 = vld [vmem:[%s4718_s6 + $0x80] sm:$0xff]  ;;  %v2982_v60 = vld [vmem:[%s4718_s6 + $0xd0] sm:$0xff]  ;;  %v2966_v61 = vld [vmem:[%s4718_s6 + $0x68] sm:$0xff]  ;;  %vm1578_vm13 = vcmp.ne.s32.totalorder %v3892_v29, 0 }
  0x22   :  { %3283 = vmatprep.subr.mxu0 %v3669_v3  ;;  %v2981_v62 = vld [vmem:[%s4718_s6 + $0xc8] sm:$0xff]  ;;  %v2965_v63 = vld [vmem:[%s4718_s6 + $0x60] sm:$0xff]  ;;  %v2978_v9 = vld [vmem:[%s4718_s6 + $0xb8] sm:$0xff] }
  0x23   :  { %1341 = vbcast.lane.b32.xlu1 %v1339_v30, 256  ;;  %v2980_v2 = vld [vmem:[%s4718_s6 + $0xc0] sm:$0xff]  ;;  %v991_v10 = vld [vmem:[%s4721_s2 + $0x38] sm:$0xff]  ;;  %v2986_v30 = vld [vmem:[%s4718_s6 + $0xe8] sm:$0xff] }
  0x24   :  { %v2975_v21 = vld [vmem:[%s4718_s6 + $0xa0] sm:$0xff]  ;;  %v2988_v23 = vld [vmem:[%s4718_s6 + $0xf8] sm:$0xff] }
  0x27   :  { %1348 = vbcast.lane.b32.xlu1 %v1346_v31, 256  ;;  %v988_v31 = vld [vmem:[%s4721_s2 + $0x20] sm:$0xff] }
  0x8e   :  { %v85_v12 = vpop.permute.xlu0 %84 }
  0x8f   :  { %vm93_vm1 = vcmp.eq.s32.totalorder %v3826_v11, %v85_v12  ;;  %vm95_vm2 = vcmp.ne.s32.totalorder %v85_v12, 0 }
  0x90   :  { %vm101_vm4 = vmand %vm93_vm1, %vm95_vm2  ;;  %vm1591_vm1 = vcmask 1044484   ;;  %vm1594_vm2 = vcmask 1045509  }
  0x91   :  { %v2943_v13 = vsel %vm101_vm4, 1.0, %v3669_v3  ;;  %vm1597_vm4 = vcmask 1046534  }
  0x92   :  { %3258 = vmatprep.mubr.msk.f32.mxu1 %vm109_vm3, %v2943_v13  ;;  %v92_v14 = vpop.permute.xlu0 %91 }
  0x93   :  { %vm94_vm5 = vcmp.eq.s32.totalorder %v3826_v11, %v92_v14  ;;  %vm96_vm6 = vcmp.ne.s32.totalorder %v92_v14, 0 }
  0x94   :  { %vm102_vm7 = vmand %vm94_vm5, %vm96_vm6  ;;  %vm1600_vm5 = vcmask 1047559   ;;  %vm1577_vm6 = vcmp.le.s32.totalorder %v3826_v11, %v3811_v4 }
  0x95   :  { %v2944_v15 = vsel %vm102_vm7, 1.0, %v3669_v3 }
  0x96   :  { %3259 = vmatmul.mubr.msk.f32.vlgmr.msra.gmra.mxu1 %vm109_vm3, %v2944_v15  ;;  %v2977_v15 = vld [vmem:[%s4718_s6 + $0xb0] sm:$0xff] }
  0x97   :  { %3262 = vmatpush3.xpose.msk.msra.mxu1 %vm202_vm0, %v194_v5 }
  0x98   :  { %3263 = vmatprep.subr.msk.mxu1 %vm202_vm0, %v193_v16 }
  0x9b   :  { %3264 = vmatpush3.xpose.msk.msra.mxu1 %vm202_vm0, %v193_v16  ;;  %v2976_v16 = vld [vmem:[%s4718_s6 + $0xa8] sm:$0xff] }
  0x9c   :  { %3265 = vmatprep.subr.msk.mxu1 %vm202_vm0, %v192_v17 }
  0x9f   :  { %3266 = vmatpush3.xpose.msk.msra.mxu1 %vm202_vm0, %v192_v17  ;;  %v990_v17 = vld [vmem:[%s4721_s2 + $0x30] sm:$0xff] }
  0xa0   :  { %3267 = vmatprep.subr.msk.mxu1 %vm202_vm0, %v191_v18 }
  0xa3   :  { %3268 = vmatpush3.xpose.msk.msra.mxu1 %vm202_vm0, %v191_v18 }
  0xa4   :  { %3294 = vmatprep.subr.mxu1 %v3669_v3 }
 0x156   :  { %v3260_v19 = vpop.f32.mrf.mxu1 }
 0x158   :  { %v182_v20 = vpop.f32.mrf.mxu1 }
 0x159   :  { %3269 = vmatprep.mubr.msk.f32.mxu1 %vm202_vm0, %v182_v20 }
 0x15a   :  { %3270 = vmatmul.mubr.msk.f32.vlgmr.msra.gmra.mxu1 %vm202_vm0, %v3260_v19 }
 0x15b   :  { %3295 = vmatpush3.msra.mxu1 %v2963_v22  ;;  %3302 = vmatprep.mubr.msk.f32.mxu1 %vm3670_vm8, %v3669_v3 }
 0x15c   :  { %3296 = vmatprep.subr.mxu1 %v3669_v3 }
 0x15d   :  { %3297 = vmatpush3.msra.mxu1 %v2962_v24  ;;  %v989_v24 = vld [vmem:[%s4721_s2 + $0x28] sm:$0xff] }
 0x15e   :  { %3298 = vmatprep.subr.mxu1 %v3669_v3 }
 0x15f   :  { %3299 = vmatpush3.msra.mxu1 %v2961_v26 }
 0x160   :  { %3300 = vmatprep.subr.mxu1 %v3669_v3 }
 0x161   :  { %3301 = vmatpush3.msra.mxu1 %v2960_v28  ;;  %v2987_v28 = vld [vmem:[%s4718_s6 + $0xf0] sm:$0xff] }
 0x162   :  { %3316 = vmatprep.subr.mxu1 %v3669_v3 }
 0x21a   :  { %v3271_v33 = vpop.f32.mrf.mxu1 }
 0x21b   :  { %v293_v34 = vadd.f32 %v3271_v33, %v2947_v32 }
 0x21c   :  { %v287_v35 = vpop.f32.mrf.mxu1 }
 0x21d   :  { %v3903_v36 = vmax.f32 %v293_v34, 0.0  ;;  %v288_v37 = vadd.f32 %v2947_v32, %v287_v35  ;;  %v2985_v35 = vld [vmem:[%s4718_s6 + $0xe0] sm:$0xff] }
 0x21f   :  { %v3905_v38 = vmax.f32 %v288_v37, 0.0  ;;  %v307_v40 = vrot.slane %v3903_v36, 1  ;;  %v391_v51 = vrot.slane %v3903_v36, 7  ;;  %v551_v54 = vrot.slane %v3903_v36, 3 }
 0x220   :  { %v466_v6 = vrot.slane %v3903_v36, 2  ;;  %v721_v7 = vrot.slane %v3903_v36, 5  ;;  %v636_v22 = vrot.slane %v3903_v36, 4  ;;  %v806_v37 = vrot.slane %v3903_v36, 6 }
 0x221   :  { %v306_v39 = vrot.slane %v3905_v38, 1  ;;  %v465_v41 = vrot.slane %v3905_v38, 2  ;;  %v635_v53 = vrot.slane %v3905_v38, 4  ;;  %v392_v55 = vsel %vm317_vm9, %v391_v51, %v3905_v38 }
 0x222   :  { %v550_v0 = vrot.slane %v3905_v38, 3  ;;  %v311_v1 = vadd.f32 %v307_v40, %v3903_v36  ;;  %v805_v5 = vrot.slane %v3905_v38, 6  ;;  %v720_v20 = vrot.slane %v3905_v38, 5 }
 0x223   :  { %v318_v44 = vsel %vm317_vm9, %v3903_v36, %v306_v39  ;;  %v476_v45 = vsel %vm317_vm9, %v307_v40, %v465_v41  ;;  %v646_v58 = vsel %vm317_vm9, %v551_v54, %v635_v53  ;;  %v310_v12 = vadd.f32 %v306_v39, %v3905_v38  ;;  %v987_v39 = vld [vmem:[%s4721_s2 + $0x18] sm:$0xff] }
 0x224   :  { %3281 = vmatmul.mubr.msk.f32.vlgmr.msra.gmra.mxu0 %vm202_vm0, %v318_v44  ;;  %3303 = vmatmul.mubr.msk.f32.vlgmr.msra.gmra.mxu1 %vm202_vm0, %v476_v45  ;;  %v561_v8 = vsel %vm317_vm9, %v466_v6, %v550_v0  ;;  %v470_v13 = vadd.f32 %v466_v6, %v311_v1  ;;  %v816_v14 = vsel %vm317_vm9, %v721_v7, %v805_v5  ;;  %v890_v34 = vrot.slane %v3905_v38, 7  ;;  %v984_v38 = vld [vmem:[%s4721_s2] sm:$0xff]  ;;  %v1109_v1 = vld [vmem:[%s4687_s10 + $0x30] sm:$0xff]  ;;  %v1128_v6 = vld [vmem:[%s4688_s11 + $0x48] sm:$0xff] }
 0x225   :  { %3284 = vmatpush3.msra.mxu0 %v303_v42  ;;  %3317 = vmatpush3.msra.mxu1 %v2973_v43  ;;  %v469_v18 = vadd.f32 %v465_v41, %v310_v12  ;;  %v731_v27 = vsel %vm317_vm9, %v636_v22, %v720_v20  ;;  %v986_v43 = vld [vmem:[%s4721_s2 + $0x10] sm:$0xff] }
 0x226   :  { %3285 = vmatprep.subr.mxu0 %v3669_v3  ;;  %3318 = vmatprep.subr.mxu1 %v3669_v3  ;;  %v555_v19 = vadd.f32 %v551_v54, %v470_v13  ;;  %v900_v42 = vsel %vm317_vm9, %v806_v37, %v890_v34  ;;  %v1115_v54 = vld [vmem:[%s4687_s10 + $0x60] sm:$0xff]  ;;  %v1105_v12 = vld [vmem:[%s4687_s10 + $0x10] sm:$0xff] }
 0x227   :  { %3286 = vmatpush3.msra.mxu0 %v302_v46  ;;  %3319 = vmatpush3.msra.mxu1 %v2972_v47  ;;  %v554_v25 = vadd.f32 %v550_v0, %v469_v18  ;;  %v985_v46 = vld [vmem:[%s4721_s2 + $0x8] sm:$0xff]  ;;  %v1130_v0 = vld [vmem:[%s4688_s11 + $0x58] sm:$0xff]  ;;  %v1125_v13 = vld [vmem:[%s4688_s11 + $0x30] sm:$0xff]  ;;  %s3671_s2 = smov 96  }
 0x228   :  { %3287 = vmatprep.subr.mxu0 %v3669_v3  ;;  %3320 = vmatprep.subr.mxu1 %v3669_v3  ;;  %v640_v26 = vadd.f32 %v636_v22, %v555_v19  ;;  %v1122_v18 = vld [vmem:[%s4688_s11 + $0x18] sm:$0xff]  ;;  %v1121_v19 = vld [vmem:[%s4688_s11 + $0x10] sm:$0xff]  ;;  %v1357_v22 = vld [vmem:[%s4690_s13 + $0x8] sm:$0xff] }
 0x229   :  { %3288 = vmatpush3.msra.mxu0 %v301_v48  ;;  %3321 = vmatpush3.msra.mxu1 %v2971_v49  ;;  %v639_v32 = vadd.f32 %v635_v53, %v554_v25  ;;  %v1116_v53 = vld [vmem:[%s4687_s10 + $0x68] sm:$0xff] }
 0x22a   :  { %3289 = vmatprep.subr.mxu0 %v3669_v3  ;;  %3322 = vmatprep.subr.mxu1 %v3669_v3  ;;  %v725_v33 = vadd.f32 %v721_v7, %v640_v26  ;;  %v1107_v7 = vld [vmem:[%s4687_s10 + $0x20] sm:$0xff] }
 0x22b   :  { %3290 = vmatpush3.msra.mxu0 %v300_v50  ;;  %3291 = vmatprep.mubr.msk.f32.mxu0 %vm3670_vm8, %v3669_v3  ;;  %v724_v40 = vadd.f32 %v720_v20, %v639_v32  ;;  %v1118_v50 = vld [vmem:[%s4687_s10 + $0x78] sm:$0xff]  ;;  %v1120_v20 = vld [vmem:[%s4688_s11 + $0x8] sm:$0xff] }
 0x22c   :  { %3323 = vmatpush3.msra.mxu1 %v2970_v52  ;;  %3324 = vmatprep.mubr.msk.f32.mxu1 %vm3670_vm8, %v3669_v3  ;;  %v810_v41 = vadd.f32 %v806_v37, %v725_v33  ;;  %v1117_v52 = vld [vmem:[%s4687_s10 + $0x70] sm:$0xff] }
 0x22d   :  { %3292 = vmatmul.mubr.msk.f32.vlgmr.msra.gmra.mxu0 %vm202_vm0, %v392_v55  ;;  %3305 = vmatprep.subr.mxu0 %v3669_v3  ;;  %v809_v44 = vadd.f32 %v805_v5, %v724_v40  ;;  %v1134_v55 = vld [vmem:[%s4688_s11 + $0x78] sm:$0xff]  ;;  %v1108_v5 = vld [vmem:[%s4687_s10 + $0x28] sm:$0xff] }
 0x22e   :  { %3325 = vmatmul.mubr.msk.f32.vlgmr.msra.gmra.mxu1 %vm202_vm0, %v646_v58  ;;  %3338 = vmatprep.subr.mxu1 %v3669_v3  ;;  %v894_v45 = vadd.f32 %v810_v41, %v391_v51  ;;  %v1113_v58 = vld [vmem:[%s4687_s10 + $0x50] sm:$0xff] }
 0x22f   :  { %3306 = vmatpush3.msra.mxu0 %v2968_v56  ;;  %3339 = vmatpush3.msra.mxu1 %v2983_v57  ;;  %v893_v47 = vadd.f32 %v890_v34, %v809_v44  ;;  %v1114_v56 = vld [vmem:[%s4687_s10 + $0x58] sm:$0xff]  ;;  %v1133_v57 = vld [vmem:[%s4688_s11 + $0x70] sm:$0xff] }
 0x230   :  { %3307 = vmatprep.subr.mxu0 %v3669_v3  ;;  %3340 = vmatprep.subr.mxu1 %v3669_v3  ;;  %v975_v48 = vmul.f32 0.125, %v894_v45 }
 0x231   :  { %3308 = vmatpush3.msra.mxu0 %v2967_v59  ;;  %3341 = vmatpush3.msra.mxu1 %v2982_v60  ;;  %v974_v36 = vmul.f32 0.125, %v893_v47  ;;  %v1112_v59 = vld [vmem:[%s4687_s10 + $0x48] sm:$0xff]  ;;  %v2990_v47 = vld [vmem:[%s4686_s9] ss:$0 sm:$0xff] }
 0x232   :  { %3309 = vmatprep.subr.mxu0 %v3669_v3  ;;  %3342 = vmatprep.subr.mxu1 %v3669_v3  ;;  %v1001_v49 = vrot.slane %v975_v48, 7  ;;  %v1132_v60 = vld [vmem:[%s4688_s11 + $0x68] sm:$0xff] }
 0x233   :  { %3310 = vmatpush3.msra.mxu0 %v2966_v61  ;;  %3343 = vmatpush3.msra.mxu1 %v2981_v62  ;;  %v1111_v61 = vld [vmem:[%s4687_s10 + $0x40] sm:$0xff] }
 0x234   :  { %3311 = vmatprep.subr.mxu0 %v3669_v3  ;;  %3344 = vmatprep.subr.mxu1 %v3669_v3  ;;  %v1002_v51 = vsel %vm317_vm9, %v1001_v49, %v974_v36  ;;  %v1131_v62 = vld [vmem:[%s4688_s11 + $0x60] sm:$0xff] }
 0x235   :  { %3312 = vmatpush3.msra.mxu0 %v2965_v63  ;;  %3313 = vmatprep.mubr.msk.f32.mxu0 %vm3670_vm8, %v3669_v3  ;;  %v1110_v63 = vld [vmem:[%s4687_s10 + $0x38] sm:$0xff] }
 0x236   :  { %3345 = vmatpush3.msra.mxu1 %v2980_v2  ;;  %3346 = vmatprep.mubr.msk.f32.mxu1 %vm3670_vm8, %v3669_v3  ;;  %v1129_v2 = vld [vmem:[%s4688_s11 + $0x50] sm:$0xff] }
 0x237   :  { %3314 = vmatmul.mubr.msk.f32.vlgmr.msra.gmra.mxu0 %vm202_vm0, %v561_v8  ;;  %3327 = vmatprep.subr.mxu0 %v3669_v3  ;;  %v1127_v8 = vld [vmem:[%s4688_s11 + $0x40] sm:$0xff] }
 0x238   :  { %3347 = vmatmul.mubr.msk.f32.vlgmr.msra.gmra.mxu1 %vm202_vm0, %v816_v14  ;;  %3360 = vmatprep.subr.mxu1 %v3669_v3  ;;  %v1104_v14 = vld [vmem:[%s4687_s10 + $0x8] sm:$0xff] }
 0x239   :  { %3328 = vmatpush3.msra.mxu0 %v2978_v9  ;;  %3361 = vmatpush3.xpose.msk.msra.mxu1 %vm202_vm0, %v991_v10  ;;  %v1106_v9 = vld [vmem:[%s4687_s10 + $0x18] sm:$0xff] }
 0x23a   :  { %3329 = vmatprep.subr.mxu0 %v3669_v3  ;;  %3362 = vmatprep.subr.mxu1 %v3669_v3  ;;  %v1126_v10 = vld [vmem:[%s4688_s11 + $0x38] sm:$0xff] }
 0x23b   :  { %3330 = vmatpush3.msra.mxu0 %v2977_v15  ;;  %3335 = vmatprep.mubr.msk.f32.mxu0 %vm3670_vm8, %v3669_v3  ;;  %v1124_v15 = vld [vmem:[%s4688_s11 + $0x28] sm:$0xff] }
 0x23c   :  { %3331 = vmatprep.subr.mxu0 %v3669_v3  ;;  %3376 = vmatprep.mubr.msk.f32.mxu1 %vm3670_vm8, %v3669_v3 }
 0x23d   :  { %3332 = vmatpush3.msra.mxu0 %v2976_v16  ;;  %3363 = vmatpush3.xpose.msk.msra.mxu1 %vm202_vm0, %v990_v17  ;;  %v1103_v16 = vld [vmem:[%s4687_s10] sm:$0xff] }
 0x23e   :  { %3333 = vmatprep.subr.mxu0 %v3669_v3  ;;  %3364 = vmatprep.subr.mxu1 %v3669_v3  ;;  %v1123_v17 = vld [vmem:[%s4688_s11 + $0x20] sm:$0xff] }
 0x23f   :  { %3334 = vmatpush3.msra.mxu0 %v2975_v21  ;;  %v1119_v21 = vld [vmem:[%s4688_s11] sm:$0xff] }
 0x240   :  { %3336 = vmatmul.mubr.msk.f32.vlgmr.msra.gmra.mxu0 %vm202_vm0, %v731_v27  ;;  %3349 = vmatprep.subr.mxu0 %v3669_v3 }
 0x241   :  { %3350 = vmatpush3.msra.mxu0 %v2988_v23  ;;  %3365 = vmatpush3.xpose.msk.msra.mxu1 %vm202_vm0, %v989_v24 }
 0x242   :  { %3351 = vmatprep.subr.mxu0 %v3669_v3  ;;  %3366 = vmatprep.subr.mxu1 %v3669_v3 }
 0x243   :  { %3352 = vmatpush3.msra.mxu0 %v2987_v28  ;;  %3357 = vmatprep.mubr.msk.f32.mxu0 %vm3670_vm8, %v3669_v3 }
 0x244   :  { %3353 = vmatprep.subr.mxu0 %v3669_v3 }
 0x245   :  { %3354 = vmatpush3.msra.mxu0 %v2986_v30  ;;  %3367 = vmatpush3.xpose.msk.msra.mxu1 %vm202_vm0, %v988_v31 }
 0x246   :  { %3355 = vmatprep.subr.mxu0 %v3669_v3  ;;  %3368 = vmatprep.subr.mxu1 %v3669_v3 }
 0x247   :  { %3356 = vmatpush3.msra.mxu0 %v2985_v35 }
 0x248   :  { %3358 = vmatmul.mubr.msk.f32.vlgmr.msra.gmra.mxu0 %vm202_vm0, %v900_v42  ;;  %3379 = vmatprep.subr.mxu0 %v3669_v3 }
 0x249   :  { %3369 = vmatpush3.xpose.msk.msra.mxu1 %vm202_vm0, %v987_v39  ;;  %3411 = vmatprep.mubr.msk.f32.mxu0 %vm3670_vm8, %v3669_v3 }
 0x24a   :  { %3370 = vmatprep.subr.mxu1 %v3669_v3  ;;  %3380 = vmatpush3.xpose.msk.msra.mxu0 %vm1135_vm10, %v1134_v55  ;;  %v1342_v55 = vpop.permute.xlu1 %1341 }
 0x24b   :  { %3381 = vmatprep.subr.mxu0 %v3669_v3  ;;  %vm1350_vm11 = vcmp.eq.s32.totalorder %v3826_v11, %v1342_v55  ;;  %v1889_v55 = vld [vmem:[%s4695_s18 + $0x18] sm:$0xff] }
 0x24d   :  { %3371 = vmatpush3.xpose.msk.msra.mxu1 %vm202_vm0, %v986_v43 }
 0x24e   :  { %3372 = vmatprep.subr.mxu1 %v3669_v3  ;;  %3382 = vmatpush3.xpose.msk.msra.mxu0 %vm1135_vm10, %v1133_v57  ;;  %v3019_v57 = vsel %vm1350_vm11, 1.0, %v3669_v3  ;;  %vm1880_vm11 = vcmask 1040384  }
 0x24f   :  { %3383 = vmatprep.subr.mxu0 %v3669_v3 }
 0x251   :  { %3373 = vmatpush3.xpose.msk.msra.mxu1 %vm202_vm0, %v985_v46 }
 0x252   :  { %3374 = vmatprep.subr.mxu1 %v3669_v3  ;;  %3384 = vmatpush3.xpose.msk.msra.mxu0 %vm1135_vm10, %v1132_v60 }
 0x253   :  { %3385 = vmatprep.subr.mxu0 %v3669_v3 }
 0x255   :  { %3375 = vmatpush3.xpose.msk.msra.mxu1 %vm202_vm0, %v984_v38  ;;  %v1101_v38 = vld [vmem:[%s4722_s1] sm:$0x3] }
 0x256   :  { %3414 = vmatprep.subr.mxu1 %v3669_v3  ;;  %3386 = vmatpush3.xpose.msk.msra.mxu0 %vm1135_vm10, %v1131_v62  ;;  %v1449_v62 = vld [vmem:[%s4691_s14 + $0x50] sm:$0xff] }
 0x257   :  { %3387 = vmatprep.subr.mxu0 %v3669_v3 }
 0x258   :  { %3377 = vmatmul.mubr.msk.f32.vlgmr.msra.gmra.mxu1 %vm202_vm0, %v1002_v51  ;;  %v2991_v51 = vld [vmem:[%s4723_s26] ss:$0 sm:$0xff] }
 0x259   :  { %3415 = vmatpush3.xpose.msra.mxu1 %v1118_v50  ;;  %3446 = vmatprep.mubr.msk.f32.mxu1 %vm3670_vm8, %v3669_v3 }
 0x25a   :  { %3416 = vmatprep.subr.mxu1 %v3669_v3  ;;  %3388 = vmatpush3.xpose.msk.msra.mxu0 %vm1135_vm10, %v1130_v0  ;;  %v1447_v0 = vld [vmem:[%s4691_s14 + $0x40] sm:$0xff] }
 0x25b   :  { %3389 = vmatprep.subr.mxu0 %v3669_v3 }
 0x25d   :  { %3417 = vmatpush3.xpose.msra.mxu1 %v1117_v52 }
 0x25e   :  { %3418 = vmatprep.subr.mxu1 %v3669_v3  ;;  %3390 = vmatpush3.xpose.msk.msra.mxu0 %vm1135_vm10, %v1129_v2  ;;  %v1445_v2 = vld [vmem:[%s4691_s14 + $0x30] sm:$0xff] }
 0x25f   :  { %3391 = vmatprep.subr.mxu0 %v3669_v3 }
 0x261   :  { %3419 = vmatpush3.xpose.msra.mxu1 %v1116_v53 }
 0x262   :  { %3420 = vmatprep.subr.mxu1 %v3669_v3  ;;  %3392 = vmatpush3.xpose.msk.msra.mxu0 %vm1135_vm10, %v1128_v6  ;;  %v1443_v6 = vld [vmem:[%s4691_s14 + $0x20] sm:$0xff] }
 0x263   :  { %3393 = vmatprep.subr.mxu0 %v3669_v3 }
 0x265   :  { %3421 = vmatpush3.xpose.msra.mxu1 %v1115_v54 }
 0x266   :  { %3422 = vmatprep.subr.mxu1 %v3669_v3  ;;  %3394 = vmatpush3.xpose.msk.msra.mxu0 %vm1135_vm10, %v1127_v8  ;;  %v1441_v8 = vld [vmem:[%s4691_s14 + $0x10] sm:$0xff] }
 0x267   :  { %3395 = vmatprep.subr.mxu0 %v3669_v3 }
 0x269   :  { %3423 = vmatpush3.xpose.msra.mxu1 %v1114_v56  ;;  %v1349_v56 = vpop.permute.xlu1 %1348 }
 0x26a   :  { %3424 = vmatprep.subr.mxu1 %v3669_v3  ;;  %3396 = vmatpush3.xpose.msk.msra.mxu0 %vm1135_vm10, %v1126_v10  ;;  %vm1351_vm12 = vcmp.eq.s32.totalorder %v3826_v11, %v1349_v56  ;;  %v1439_v10 = vld [vmem:[%s4691_s14] sm:$0xff]  ;;  %v1888_v56 = vld [vmem:[%s4695_s18 + $0x10] sm:$0xff] }
 0x26b   :  { %3397 = vmatprep.subr.mxu0 %v3669_v3  ;;  %v3020_v60 = vsel %vm1351_vm12, 1.0, %v3669_v3  ;;  %vm1882_vm12 = vcmask 1041408  }
 0x26d   :  { %3425 = vmatpush3.xpose.msra.mxu1 %v1113_v58 }
 0x26e   :  { %3426 = vmatprep.subr.mxu1 %v3669_v3  ;;  %3398 = vmatpush3.xpose.msk.msra.mxu0 %vm1135_vm10, %v1125_v13 }
 0x26f   :  { %3399 = vmatprep.subr.mxu0 %v3669_v3 }
 0x271   :  { %3427 = vmatpush3.xpose.msra.mxu1 %v1112_v59  ;;  %v1356_v59 = vld [vmem:[%s4690_s13] sm:$0xff] }
 0x272   :  { %3428 = vmatprep.subr.mxu1 %v3669_v3  ;;  %3400 = vmatpush3.xpose.msk.msra.mxu0 %vm1135_vm10, %v1124_v15 }
 0x273   :  { %3401 = vmatprep.subr.mxu0 %v3669_v3 }
 0x275   :  { %3429 = vmatpush3.xpose.msra.mxu1 %v1111_v61  ;;  %v1450_v61 = vld [vmem:[%s4691_s14 + $0x58] sm:$0xff] }
 0x276   :  { %3430 = vmatprep.subr.mxu1 %v3669_v3  ;;  %3402 = vmatpush3.xpose.msk.msra.mxu0 %vm1135_vm10, %v1123_v17 }
 0x277   :  { %3403 = vmatprep.subr.mxu0 %v3669_v3 }
 0x279   :  { %3431 = vmatpush3.xpose.msra.mxu1 %v1110_v63  ;;  %v1448_v63 = vld [vmem:[%s4691_s14 + $0x48] sm:$0xff] }
 0x27a   :  { %3432 = vmatprep.subr.mxu1 %v3669_v3  ;;  %3404 = vmatpush3.xpose.msk.msra.mxu0 %vm1135_vm10, %v1122_v18 }
 0x27b   :  { %3405 = vmatprep.subr.mxu0 %v3669_v3 }
 0x27d   :  { %3433 = vmatpush3.xpose.msra.mxu1 %v1109_v1  ;;  %v1446_v1 = vld [vmem:[%s4691_s14 + $0x38] sm:$0xff] }
 0x27e   :  { %3434 = vmatprep.subr.mxu1 %v3669_v3  ;;  %3406 = vmatpush3.xpose.msk.msra.mxu0 %vm1135_vm10, %v1121_v19  ;;  %v3023_v19 = vld [vmem:[%s4692_s15] ss:$0 sm:$0xff] }
 0x27f   :  { %3407 = vmatprep.subr.mxu0 %v3669_v3 }
 0x281   :  { %3435 = vmatpush3.xpose.msra.mxu1 %v1108_v5  ;;  %v1444_v5 = vld [vmem:[%s4691_s14 + $0x28] sm:$0xff] }
 0x282   :  { %3436 = vmatprep.subr.mxu1 %v3669_v3  ;;  %3408 = vmatpush3.xpose.msk.msra.mxu0 %vm1135_vm10, %v1120_v20 }
 0x283   :  { %3409 = vmatprep.subr.mxu0 %v3669_v3 }
 0x285   :  { %3437 = vmatpush3.xpose.msra.mxu1 %v1107_v7  ;;  %v1442_v7 = vld [vmem:[%s4691_s14 + $0x18] sm:$0xff] }
 0x286   :  { %3438 = vmatprep.subr.mxu1 %v3669_v3  ;;  %3410 = vmatpush3.xpose.msk.msra.mxu0 %vm1135_vm10, %v1119_v21 }
 0x287   :  { %3449 = vmatprep.subr.mxu0 %v1357_v22 }
 0x289   :  { %3439 = vmatpush3.xpose.msra.mxu1 %v1106_v9  ;;  %v1440_v9 = vld [vmem:[%s4691_s14 + $0x8] sm:$0xff]  ;;  %s3674_s14 = smov 32  }
 0x28a   :  { %3440 = vmatprep.subr.mxu1 %v3669_v3 }
 0x28d   :  { %3441 = vmatpush3.xpose.msra.mxu1 %v1105_v12 }
 0x28e   :  { %3442 = vmatprep.subr.mxu1 %v3669_v3 }
 0x291   :  { %3443 = vmatpush3.xpose.msra.mxu1 %v1104_v14 }
 0x292   :  { %3444 = vmatprep.subr.mxu1 %v3669_v3 }
 0x295   :  { %3445 = vmatpush3.xpose.msra.mxu1 %v1103_v16 }
 0x296   :  { %3483 = vmatprep.subr.mxu1 %v3669_v3 }
 0x2e4   :  { %v387_v23 = vpop.f32.mrf.mxu0  ;;  %v545_v24 = vpop.f32.mrf.mxu1 }
 0x2e6   :  { %v3282_v25 = vpop.f32.mrf.mxu0  ;;  %v3304_v26 = vpop.f32.mrf.mxu1 }
 0x2e7   :  { %v3672_v25 = vmov 0  }
 0x2e8   :  { %v4365_v26 = vsel %vm1578_vm13, 1, %v3672_v25  ;;  %vm1884_vm13 = vcmask 1042432   ;;  %v4534_v25 = vld [vmem:[%s4694_s17] ss:$0 sm:$0xff] }
 0x2e9   :  { %v1587_v29 = vrot.slane %v4365_v26, 5 }
 0x2ed   :  { %v461_v27 = vpop.f32.mrf.mxu0 }
 0x2ee   :  { %v715_v28 = vpop.f32.mrf.mxu1  ;;  %v462_v32 = vadd.f32 %v461_v27, %v387_v23  ;;  %v1599_v27 = vrot.slane %v4365_v26, 1 }
 0x2ef   :  { %v3293_v30 = vpop.f32.mrf.mxu0 }
 0x2f0   :  { %v3326_v31 = vpop.f32.mrf.mxu1  ;;  %v549_v39 = vadd.f32 %v545_v24, %v462_v32  ;;  %v1582_v30 = vrot.slane %v4365_v26, 7 }
 0x2f1   :  { %v1584_v31 = vrot.slane %v4365_v26, 6 }
 0x2f2   :  { %v1583_v32 = vsel %vm317_vm9, %v1582_v30, %v4365_v26 }
 0x2f7   :  { %v630_v33 = vpop.f32.mrf.mxu0 }
 0x2f8   :  { %v885_v34 = vpop.f32.mrf.mxu1  ;;  %v634_v40 = vadd.f32 %v630_v33, %v549_v39  ;;  %v1586_v33 = vsel %vm1585_vm14, %v1584_v31, %v1583_v32 }
 0x2f9   :  { %v3315_v35 = vpop.f32.mrf.mxu0 }
 0x2fa   :  { %v3348_v37 = vpop.f32.mrf.mxu1  ;;  %v719_v42 = vadd.f32 %v715_v28, %v634_v40  ;;  %v4370_v28 = vsel %vm317_vm9, %v4365_v26, %v1599_v27  ;;  %v1589_v35 = vsel %vm1588_vm15, %v1587_v29, %v1586_v33  ;;  %v1596_v40 = vrot.slane %v4365_v26, 2 }
 0x2fb   :  { %v1593_v37 = vrot.slane %v4365_v26, 3 }
 0x300   :  { %v800_v41 = vpop.f32.mrf.mxu0 }
 0x301   :  { %v804_v44 = vadd.f32 %v800_v41, %v719_v42 }
 0x302   :  { %v3337_v43 = vpop.f32.mrf.mxu0 }
 0x303   :  { %v889_v45 = vadd.f32 %v885_v34, %v804_v44  ;;  %v1590_v34 = vrot.slane %v4365_v26, 4 }
 0x305   :  { %v1592_v39 = vsel %vm1591_vm1, %v1590_v34, %v1589_v35 }
 0x306   :  { %v1595_v41 = vsel %vm1594_vm2, %v1593_v37, %v1592_v39 }
 0x307   :  { %v1598_v42 = vsel %vm1597_vm4, %v1596_v40, %v1595_v41 }
 0x308   :  { %v969_v46 = vpop.f32.mrf.mxu0  ;;  %v1601_v43 = vsel %vm1600_vm5, %v1599_v27, %v1598_v42 }
 0x309   :  { %v973_v48 = vadd.f32 %v969_v46, %v889_v45  ;;  %vm1602_vm7 = vcmp.ne.s32.totalorder %v1601_v43, 0 }
 0x30a   :  { %v3359_v36 = vpop.f32.mrf.mxu0  ;;  %vm1603_vm9 = vmand %vm1577_vm6, %vm1602_vm7  ;;  %vm2075_vm7 = vcmask 31744  }
 0x30b   :  { %v983_v49 = vadd.f32 %v2990_v47, %v973_v48 }
 0x30d   :  { %v1102_v50 = vadd.f32 %v1101_v38, %v983_v49  ;;  %1100 = vst [vmem:[#allocation4] sm:$0x3] %v983_v49  ;;  %v3018_v38 = vld [vmem:[%s4689_s12] ss:$0 sm:$0xff] }
 0x30f   :  { %3447 = vmatmul.mubr.f32.vlgmr.msra.gmra.mxu1 %v1102_v50 }
 0x310   :  { %3485 = vmatprep.mubr.msk.f32.mxu1 %vm3670_vm8, %v3669_v3 }
 0x318   :  { %v1095_v52 = vpop.f32.mrf.mxu1 }
 0x319   :  { %v1096_v53 = vadd.f32 %v2991_v51, %v1095_v52  ;;  %v1893_v51 = vld [vmem:[%s4695_s18 + $0x38] sm:$0xff]  ;;  %v1892_v52 = vld [vmem:[%s4695_s18 + $0x30] sm:$0xff] }
 0x31a   :  { %v3378_v54 = vpop.f32.mrf.mxu1 }
 0x31b   :  { %3607 = vtanh.f32 %v1096_v53  ;;  %v1891_v53 = vld [vmem:[%s4695_s18 + $0x28] sm:$0xff]  ;;  %v1890_v54 = vld [vmem:[%s4695_s18 + $0x20] sm:$0xff] }
 0x328   :  { %v3608_v58 = vpop.eup %3607 }
 0x329   :  { %3412 = vmatmul.mubr.msk.f32.vlgmr.msra.gmra.mxu0 %vm1135_vm10, %v3608_v58  ;;  %vm1683_vm10 = vcmask 64512  }
 0x32a   :  { %3450 = vmatpush3.msra.mxu0 %v1357_v22  ;;  %3453 = vmatprep.mubr.msk.f32.mxu0 %vm109_vm3, %v3019_v57 }
 0x32b   :  { %3451 = vmatprep.subr.mxu0 %v1356_v59 }
 0x32c   :  { %3452 = vmatpush3.msra.mxu0 %v1356_v59 }
 0x32d   :  { %3454 = vmatmul.mubr.msk.f32.vlgmr.msra.gmra.mxu0 %vm109_vm3, %v3020_v60  ;;  %3456 = vmatprep.subr.msk.mxu0 %vm202_vm0, %v1450_v61 }
 0x32e   :  { %3457 = vmatpush3.xpose.msk.msra.mxu0 %vm202_vm0, %v1450_v61 }
 0x32f   :  { %3458 = vmatprep.subr.msk.mxu0 %vm202_vm0, %v1449_v62 }
 0x332   :  { %3459 = vmatpush3.xpose.msk.msra.mxu0 %vm202_vm0, %v1449_v62  ;;  %v1887_v62 = vld [vmem:[%s4695_s18 + $0x8] sm:$0xff] }
 0x333   :  { %3460 = vmatprep.subr.msk.mxu0 %vm202_vm0, %v1448_v63 }
 0x336   :  { %3461 = vmatpush3.xpose.msk.msra.mxu0 %vm202_vm0, %v1448_v63  ;;  %v1886_v63 = vld [vmem:[%s4695_s18] sm:$0xff] }
 0x337   :  { %3462 = vmatprep.subr.msk.mxu0 %vm202_vm0, %v1447_v0 }
 0x33a   :  { %3463 = vmatpush3.xpose.msk.msra.mxu0 %vm202_vm0, %v1447_v0 }
 0x33b   :  { %3464 = vmatprep.subr.msk.mxu0 %vm202_vm0, %v1446_v1 }
 0x33e   :  { %3465 = vmatpush3.xpose.msk.msra.mxu0 %vm202_vm0, %v1446_v1 }
 0x33f   :  { %3466 = vmatprep.subr.msk.mxu0 %vm202_vm0, %v1445_v2 }
 0x342   :  { %3467 = vmatpush3.xpose.msk.msra.mxu0 %vm202_vm0, %v1445_v2 }
 0x343   :  { %3468 = vmatprep.subr.msk.mxu0 %vm202_vm0, %v1444_v5 }
 0x346   :  { %3469 = vmatpush3.xpose.msk.msra.mxu0 %vm202_vm0, %v1444_v5 }
 0x347   :  { %3470 = vmatprep.subr.msk.mxu0 %vm202_vm0, %v1443_v6 }
 0x34a   :  { %3471 = vmatpush3.xpose.msk.msra.mxu0 %vm202_vm0, %v1443_v6 }
 0x34b   :  { %3472 = vmatprep.subr.msk.mxu0 %vm202_vm0, %v1442_v7 }
 0x34e   :  { %3473 = vmatpush3.xpose.msk.msra.mxu0 %vm202_vm0, %v1442_v7 }
 0x34f   :  { %3474 = vmatprep.subr.msk.mxu0 %vm202_vm0, %v1441_v8 }
 0x352   :  { %3475 = vmatpush3.xpose.msk.msra.mxu0 %vm202_vm0, %v1441_v8 }
 0x353   :  { %3476 = vmatprep.subr.msk.mxu0 %vm202_vm0, %v1440_v9 }
 0x356   :  { %3477 = vmatpush3.xpose.msk.msra.mxu0 %vm202_vm0, %v1440_v9 }
 0x357   :  { %3478 = vmatprep.subr.msk.mxu0 %vm202_vm0, %v1439_v10 }
 0x35a   :  { %3479 = vmatpush3.xpose.msk.msra.mxu0 %vm202_vm0, %v1439_v10 }
 0x35b   :  { %3504 = vmatprep.subr.mxu0 %v3669_v3 }
 0x3cf   :  { %v1323_v12 = vpop.f32.mrf.mxu1 }
 0x3d1   :  { %v3448_v13 = vpop.f32.mrf.mxu1 }
 0x3e9   :  { %v1253_v14 = vpop.f32.mrf.mxu0 }
 0x3ea   :  { %v1324_v15 = vadd.f32 %v1323_v12, %v1253_v14  ;;  %v4475_v14 = vld [vmem:[%s4693_s16 + $0x18] sm:$0xff] }
 0x3eb   :  { %v3413_v16 = vpop.f32.mrf.mxu0 }
 0x3ec   :  { %v4407_v36 = vadd.f32 %v3018_v38, %v1324_v15  ;;  %v4488_v15 = vld [vmem:[%s4693_s16 + $0x10] sm:$0xff]  ;;  %v4498_v16 = vld [vmem:[%s4693_s16 + $0x8] sm:$0xff] }
 0x3ed   :  { %v3455_v17 = vpop.f32.mrf.mxu0 }
 0x3ee   :  { %v1868_v49 = vrot.slane %v4407_v36, 7  ;;  %v1872_v50 = vrot.slane %v4407_v36, 6  ;;  %v1876_v0 = vrot.slane %v4407_v36, 5 }
 0x3ef   :  { %v1430_v18 = vpop.f32.mrf.mxu0 }
 0x3f0   :  { %3480 = vmatprep.mubr.msk.f32.mxu0 %vm202_vm0, %v1430_v18 }
 0x3f1   :  { %3481 = vmatmul.mubr.msk.f32.vlgmr.msra.gmra.mxu0 %vm202_vm0, %v3455_v17  ;;  %v4515_v17 = vld [vmem:[%s4693_s16] sm:$0xff] }
 0x3f2   :  { %3520 = vmatprep.mubr.msk.f32.mxu0 %vm3670_vm8, %v3669_v3  ;;  %3505 = vmatpush3.xpose.msk.msra.mxu0 %vm202_vm0, %v1893_v51 }
 0x3f3   :  { %3506 = vmatprep.subr.mxu0 %v3669_v3 }
 0x3f6   :  { %3507 = vmatpush3.xpose.msk.msra.mxu0 %vm202_vm0, %v1892_v52 }
 0x3f7   :  { %3508 = vmatprep.subr.mxu0 %v3669_v3 }
 0x3fa   :  { %3509 = vmatpush3.xpose.msk.msra.mxu0 %vm202_vm0, %v1891_v53 }
 0x3fb   :  { %3510 = vmatprep.subr.mxu0 %v3669_v3 }
 0x3fe   :  { %3511 = vmatpush3.xpose.msk.msra.mxu0 %vm202_vm0, %v1890_v54 }
 0x3ff   :  { %3512 = vmatprep.subr.mxu0 %v3669_v3 }
 0x402   :  { %3513 = vmatpush3.xpose.msk.msra.mxu0 %vm202_vm0, %v1889_v55 }
 0x403   :  { %3514 = vmatprep.subr.mxu0 %v3669_v3 }
 0x406   :  { %3515 = vmatpush3.xpose.msk.msra.mxu0 %vm202_vm0, %v1888_v56 }
 0x407   :  { %3516 = vmatprep.subr.mxu0 %v3669_v3 }
 0x40a   :  { %3517 = vmatpush3.xpose.msk.msra.mxu0 %vm202_vm0, %v1887_v62 }
 0x40b   :  { %3518 = vmatprep.subr.mxu0 %v3669_v3 }
 0x40e   :  { %3519 = vmatpush3.xpose.msk.msra.mxu0 %vm202_vm0, %v1886_v63 }
 0x40f   :  { %3561 = vmatprep.subr.mxu0 %v3669_v3 }
 0x4b1   :  { %v3482_v20 = vpop.f32.mrf.mxu0 }
 0x4b2   :  { %v4352_v21 = vadd.f32 %v3482_v20, %v3023_v19  ;;  %v4523_v20 = vld [vmem:[%s4696_s19] ss:$0 sm:$0xff] }
 0x4b3   :  { %v1566_v22 = vpop.f32.mrf.mxu0 }
 0x4b4   :  { %v4354_v23 = vadd.f32 %v3023_v19, %v1566_v22 }
 0x4b6   :  { %1605 = vrot.lane.b32.xlu0 %v4354_v23, %s3671_s2 }
 0x528   :  { %v1606_v24 = vpop.permute.xlu0 %1605 }
 0x529   :  { %3484 = vmatpush3.xpose.msk.msra.mxu1 %vm202_vm0, %v1606_v24 }
 0x52a   :  { %3488 = vmatprep.subr.mxu1 %v3669_v3 }
 0x52c   :  { %3486 = vmatmul.mubr.msk.f32.vlgmr.msra.gmra.mxu1 %vm202_vm0, %v4354_v23 }
 0x52d   :  { %3490 = vmatprep.mubr.msk.f32.mxu1 %vm3670_vm8, %v3669_v3 }
 0x5ec   :  { %v1677_v44 = vpop.f32.mrf.mxu1 }
 0x5ed   :  { %v1681_v45 = vmul.f32 0.17677669, %v1677_v44 }
 0x5ee   :  { %v3487_v46 = vpop.f32.mrf.mxu1 }
 0x5ef   :  { %v1682_v47 = vsel %vm1603_vm9, %v1681_v45, -1e+10  ;;  %vm2092_vm9 = vcmask 1043456  }
 0x5f0   :  { %v1684_v48 = vsel %vm1683_vm10, %v1682_v47, -inf }
 0x5f1   :  { %1685 = vmax.xlane.f32.xlu1 %v1684_v48 }
 0x602   :  { %1869 = vrot.lane.b32.xlu1 %v1868_v49, %s3671_s2 }
 0x606   :  { %1873 = vrot.lane.b32.xlu1 %v1872_v50, %s3673_s3 }
 0x67a   :  { %v1686_v57 = vpop.xlane.xlu1 %1685 }
 0x67b   :  { %v1687_v58 = vsub.f32 %v1682_v47, %v1686_v57 }
 0x67d   :  { %v1688_v59 = vmul.f32 1.442695, %v1687_v58  ;;  %v2256_v58 = vsel %vm1585_vm14, %v1582_v30, %v4370_v28  ;;  %v4598_v28 = vld [vmem:[%s4698_s21] ss:$0 sm:$0xff] }
 0x67e   :  { %v1870_v1 = vpop.permute.xlu1 %1869 }
 0x67f   :  { %3609 = vpow2.f32 %v1688_v59  ;;  %v1881_v7 = vsel %vm1880_vm11, %v4407_v36, %v1870_v1  ;;  %v2257_v59 = vsel %vm1588_vm15, %v1584_v31, %v2256_v58 }
 0x682   :  { %v1874_v6 = vpop.permute.xlu1 %1873 }
 0x683   :  { %v1883_v8 = vsel %vm1882_vm12, %v1881_v7, %v1874_v6 }
 0x68c   :  { %v3610_v60 = vpop.eup %3609 }
 0x68d   :  { %v1690_v61 = vsel %vm1683_vm10, %v3610_v60, 0.0 }
 0x68e   :  { %1691 = vadd.xlane.f32.xlu0 %v1690_v61 }
 0x6a4   :  { %1695 = vrot.lane.b32.xlu0 %v4354_v23, %s3673_s3 }
 0x6a8   :  { %1877 = vrot.lane.b32.xlu0 %v1876_v0, %s3674_s14 }
 0x717   :  { %v1692_v2 = vpop.xlane.xlu0 %1691 }
 0x718   :  { %3611 = vrcp.f32 %v1692_v2 }
 0x71b   :  { %v1696_v5 = vpop.permute.xlu0 %1695 }
 0x71c   :  { %3489 = vmatpush3.msra.mxu1 %v1696_v5 }
 0x71d   :  { %3493 = vmatprep.subr.mxu1 %v3669_v3 }
 0x71f   :  { %v1878_v9 = vpop.permute.xlu0 %1877 }
 0x720   :  { %v1885_v10 = vsel %vm1884_vm13, %v1883_v8, %v1878_v9 }
 0x721   :  { %3521 = vmatmul.mubr.msk.f32.vlgmr.msra.gmra.mxu0 %vm202_vm0, %v1885_v10 }
 0x722   :  { %3562 = vmatpush3.xpose.msk.msra.mxu0 %vm202_vm0, %v1893_v51  ;;  %3577 = vmatprep.mubr.msk.f32.mxu0 %vm3670_vm8, %v3669_v3 }
 0x723   :  { %3563 = vmatprep.subr.mxu0 %v3669_v3 }
 0x725   :  { %v3612_v12 = vpop.eup %3611 }
 0x726   :  { %v1694_v13 = vmul.f32 %v3612_v12, %v3610_v60  ;;  %3564 = vmatpush3.xpose.msk.msra.mxu0 %vm202_vm0, %v1892_v52  ;;  %v2258_v60 = vsel %vm1591_vm1, %v1587_v29, %v2257_v59 }
 0x727   :  { %3565 = vmatprep.subr.mxu0 %v3669_v3  ;;  %v2259_v61 = vsel %vm1594_vm2, %v1590_v34, %v2258_v60 }
 0x728   :  { %3491 = vmatmul.mubr.msk.f32.vlgmr.msra.gmra.mxu1 %vm1683_vm10, %v1694_v13 }
 0x729   :  { %3494 = vmatpush3.xpose.msk.msra.mxu1 %vm202_vm0, %v4475_v14  ;;  %3501 = vmatprep.mubr.msk.f32.mxu1 %vm3670_vm8, %v3669_v3 }
 0x72a   :  { %3495 = vmatprep.subr.mxu1 %v3669_v3  ;;  %3566 = vmatpush3.xpose.msk.msra.mxu0 %vm202_vm0, %v1891_v53  ;;  %v4550_v53 = vld [vmem:[%s4697_s20 + $0x8] sm:$0xff] }
 0x72b   :  { %3567 = vmatprep.subr.mxu0 %v3669_v3 }
 0x72d   :  { %3496 = vmatpush3.xpose.msk.msra.mxu1 %vm202_vm0, %v4488_v15 }
 0x72e   :  { %3497 = vmatprep.subr.mxu1 %v3669_v3  ;;  %3568 = vmatpush3.xpose.msk.msra.mxu0 %vm202_vm0, %v1890_v54  ;;  %v4565_v54 = vld [vmem:[%s4697_s20] sm:$0xff] }
 0x72f   :  { %3569 = vmatprep.subr.mxu0 %v3669_v3 }
 0x731   :  { %3498 = vmatpush3.xpose.msk.msra.mxu1 %vm202_vm0, %v4498_v16 }
 0x732   :  { %3499 = vmatprep.subr.mxu1 %v3669_v3  ;;  %3570 = vmatpush3.xpose.msk.msra.mxu0 %vm202_vm0, %v1889_v55 }
 0x733   :  { %3571 = vmatprep.subr.mxu0 %v3669_v3 }
 0x735   :  { %3500 = vmatpush3.xpose.msk.msra.mxu1 %vm202_vm0, %v4515_v17 }
 0x736   :  { %3572 = vmatpush3.xpose.msk.msra.mxu0 %vm202_vm0, %v1888_v56  ;;  %3523 = vmatprep.subr.mxu1 %v3669_v3 }
 0x737   :  { %3573 = vmatprep.subr.mxu0 %v3669_v3 }
 0x73a   :  { %3574 = vmatpush3.xpose.msk.msra.mxu0 %vm202_vm0, %v1887_v62  ;;  %v2260_v62 = vsel %vm1597_vm4, %v1593_v37, %v2259_v61 }
 0x73b   :  { %3575 = vmatprep.subr.mxu0 %v3669_v3  ;;  %v2261_v30 = vsel %vm1600_vm5, %v1596_v40, %v2260_v62 }
 0x73c   :  { %vm2262_vm14 = vcmp.ne.s32.totalorder %v2261_v30, 0 }
 0x73d   :  { %vm2263_vm15 = vmand %vm1577_vm6, %vm2262_vm14 }
 0x73e   :  { %3576 = vmatpush3.xpose.msk.msra.mxu0 %vm202_vm0, %v1886_v63 }
 0x7e1   :  { %v1994_v18 = vpop.f32.mrf.mxu0 }
 0x7e2   :  { %v1995_v22 = vadd.f32 %v4523_v20, %v1994_v18 }
 0x7e3   :  { %v3522_v19 = vpop.f32.mrf.mxu0 }
 0x7e8   :  { %v1767_v23 = vpop.f32.mrf.mxu1 }
 0x7e9   :  { %3502 = vmatmul.mubr.msk.f32.vlgmr.msra.gmra.mxu1 %vm202_vm0, %v1767_v23 }
 0x7ea   :  { %3524 = vmatpush3.xpose.msk.msra.mxu1 %vm202_vm0, %v1995_v22  ;;  %v3492_v24 = vpop.f32.mrf.mxu1  ;;  %3525 = vmatprep.mubr.msk.f32.mxu1 %vm3670_vm8, %v3669_v3 }
 0x7eb   :  { %3528 = vmatprep.subr.mxu1 %v3669_v3 }
 0x8a9   :  { %v1863_v27 = vpop.f32.mrf.mxu1 }
 0x8aa   :  { %v1864_v32 = vadd.f32 %v4534_v25, %v1863_v27 }
 0x8ab   :  { %v3503_v33 = vpop.f32.mrf.mxu1 }
 0x8ac   :  { %3526 = vmatmul.mubr.msk.f32.vlgmr.msra.gmra.mxu1 %vm202_vm0, %v1864_v32 }
 0x8ad   :  { %3530 = vmatprep.mubr.msk.f32.mxu1 %vm3670_vm8, %v3669_v3 }
 0x96c   :  { %v2070_v35 = vpop.f32.mrf.mxu1 }
 0x96d   :  { %v2074_v39 = vmul.f32 0.17677669, %v2070_v35 }
 0x96e   :  { %v3527_v41 = vpop.f32.mrf.mxu1 }
 0x96f   :  { %v2076_v42 = vsel %vm2075_vm7, %v2074_v39, -inf }
 0x970   :  { %2077 = vmax.xlane.f32.xlu1 %v2076_v42 }
 0x981   :  { %2265 = vrot.lane.b32.xlu1 %v4352_v21, %s3671_s2 }
 0x9f9   :  { %v2078_v43 = vpop.xlane.xlu1 %2077 }
 0x9fa   :  { %v2079_v44 = vsub.f32 %v2074_v39, %v2078_v43 }
 0x9fc   :  { %v2080_v45 = vmul.f32 1.442695, %v2079_v44 }
 0x9fd   :  { %v2266_v56 = vpop.permute.xlu1 %2265 }
 0x9fe   :  { %3613 = vpow2.f32 %v2080_v45 }
 0xa0b   :  { %v3614_v46 = vpop.eup %3613 }
 0xa0c   :  { %v2082_v47 = vsel %vm2075_vm7, %v3614_v46, 0.0 }
 0xa0d   :  { %2083 = vadd.xlane.f32.xlu0 %v2082_v47 }
 0xa23   :  { %2087 = vrot.lane.b32.xlu0 %v1995_v22, %s3671_s2 }
 0xa96   :  { %v2084_v48 = vpop.xlane.xlu0 %2083 }
 0xa97   :  { %3615 = vrcp.f32 %v2084_v48 }
 0xa9a   :  { %v2088_v38 = vpop.permute.xlu0 %2087 }
 0xa9b   :  { %3529 = vmatpush3.msk.msra.mxu1 %vm2092_vm9, %v2088_v38 }
 0xa9c   :  { %3533 = vmatprep.subr.mxu1 %v3669_v3 }
 0xaa4   :  { %v3616_v51 = vpop.eup %3615 }
 0xaa5   :  { %v2086_v52 = vmul.f32 %v3616_v51, %v3614_v46 }
 0xaa7   :  { %3531 = vmatmul.mubr.msk.f32.vlgmr.msra.gmra.mxu1 %vm2075_vm7, %v2086_v52  ;;  %2254 = vst.msk [vmem:[%s4700_s23] sm:$0xff] %vm2075_vm7, %v2086_v52 }
 0xaa8   :  { %3534 = vmatpush3.xpose.msk.msra.mxu1 %vm202_vm0, %v4550_v53  ;;  %3537 = vmatprep.mubr.msk.f32.mxu1 %vm3670_vm8, %v3669_v3 }
 0xaa9   :  { %3535 = vmatprep.subr.mxu1 %v3669_v3 }
 0xaac   :  { %3536 = vmatpush3.xpose.msk.msra.mxu1 %vm202_vm0, %v4565_v54 }
 0xaad   :  { %3540 = vmatprep.subr.mxu1 %v3669_v3 }
 0xb67   :  { %v2161_v55 = vpop.f32.mrf.mxu1 }
 0xb68   :  { %3538 = vmatmul.mubr.msk.f32.vlgmr.msra.gmra.mxu1 %vm202_vm0, %v2161_v55 }
 0xb69   :  { %3541 = vmatpush3.xpose.msk.msra.mxu1 %vm202_vm0, %v2266_v56  ;;  %v3532_v57 = vpop.f32.mrf.mxu1  ;;  %3542 = vmatprep.mubr.msk.f32.mxu1 %vm3670_vm8, %v3669_v3 }
 0xb6a   :  { %3545 = vmatprep.subr.mxu1 %v3669_v3 }
 0xb6c   :  { %3543 = vmatmul.mubr.msk.f32.vlgmr.msra.gmra.mxu1 %vm202_vm0, %v4352_v21 }
 0xb6d   :  { %3547 = vmatprep.mubr.msk.f32.mxu1 %vm3670_vm8, %v3669_v3 }
 0xc28   :  { %v2249_v31 = vpop.f32.mrf.mxu1 }
 0xc29   :  { %v2250_v29 = vadd.f32 %v4598_v28, %v2249_v31 }
 0xc2a   :  { %v3539_v63 = vpop.f32.mrf.mxu1 }
 0xc2b   :  { %2253 = vst.msk [vmem:[#allocation2] sm:$0xff] %vm109_vm3, %v2250_v29 }
 0xc2c   :  { %v2337_v34 = vpop.f32.mrf.mxu1 }
 0xc2d   :  { %v2341_v37 = vmul.f32 0.17677669, %v2337_v34 }
 0xc2e   :  { %v3544_v0 = vpop.f32.mrf.mxu1 }
 0xc2f   :  { %v2342_v1 = vsel %vm2263_vm15, %v2341_v37, -1e+10 }
 0xc30   :  { %v2343_v2 = vsel %vm1683_vm10, %v2342_v1, -inf }
 0xc31   :  { %2344 = vmax.xlane.f32.xlu1 %v2343_v2 }
 0xc42   :  { %2528 = vrot.lane.b32.xlu1 %v4407_v36, %s3671_s2 }
 0xc46   :  { %2531 = vrot.lane.b32.xlu1 %v1868_v49, %s3673_s3  ;;  %v2526_v49 = vrot.slane %v4407_v36, 1 }
 0xcba   :  { %v2345_v26 = vpop.xlane.xlu1 %2344 }
 0xcbb   :  { %v2346_v40 = vsub.f32 %v2342_v1, %v2345_v26 }
 0xcbd   :  { %v2347_v5 = vmul.f32 1.442695, %v2346_v40 }
 0xcbe   :  { %v2529_v11 = vpop.permute.xlu1 %2528 }
 0xcbf   :  { %3617 = vpow2.f32 %v2347_v5  ;;  %v2537_v10 = vsel %vm1880_vm11, %v2526_v49, %v2529_v11 }
 0xcc2   :  { %v2532_v9 = vpop.permute.xlu1 %2531 }
 0xcc3   :  { %v2538_v12 = vsel %vm1882_vm12, %v2537_v10, %v2532_v9 }
 0xccc   :  { %v3618_v6 = vpop.eup %3617 }
 0xccd   :  { %v2349_v4 = vsel %vm1683_vm10, %v3618_v6, 0.0 }
 0xcce   :  { %2350 = vadd.xlane.f32.xlu0 %v2349_v4 }
 0xce4   :  { %2354 = vrot.lane.b32.xlu0 %v4352_v21, %s3673_s3 }
 0xce8   :  { %2534 = vrot.lane.b32.xlu0 %v1872_v50, %s3674_s14 }
 0xd57   :  { %v2351_v7 = vpop.xlane.xlu0 %2350 }
 0xd58   :  { %3619 = vrcp.f32 %v2351_v7 }
 0xd5b   :  { %v2355_v8 = vpop.permute.xlu0 %2354 }
 0xd5c   :  { %3546 = vmatpush3.msra.mxu1 %v2355_v8 }
 0xd5d   :  { %3550 = vmatprep.subr.mxu1 %v3669_v3 }
 0xd5f   :  { %v2535_v13 = vpop.permute.xlu0 %2534 }
 0xd60   :  { %v2539_v21 = vsel %vm1884_vm13, %v2538_v12, %v2535_v13 }
 0xd61   :  { %3578 = vmatmul.mubr.msk.f32.vlgmr.msra.gmra.mxu0 %vm202_vm0, %v2539_v21 }
 0xd65   :  { %v3620_v50 = vpop.eup %3619 }
 0xd66   :  { %v2353_v18 = vmul.f32 %v3620_v50, %v3618_v6 }
 0xd68   :  { %3548 = vmatmul.mubr.msk.f32.vlgmr.msra.gmra.mxu1 %vm1683_vm10, %v2353_v18 }
 0xd69   :  { %3551 = vmatpush3.xpose.msk.msra.mxu1 %vm202_vm0, %v4475_v14  ;;  %3558 = vmatprep.mubr.msk.f32.mxu1 %vm3670_vm8, %v3669_v3 }
 0xd6a   :  { %3552 = vmatprep.subr.mxu1 %v3669_v3 }
 0xd6d   :  { %3553 = vmatpush3.xpose.msk.msra.mxu1 %vm202_vm0, %v4488_v15 }
 0xd6e   :  { %3554 = vmatprep.subr.mxu1 %v3669_v3 }
 0xd71   :  { %3555 = vmatpush3.xpose.msk.msra.mxu1 %vm202_vm0, %v4498_v16 }
 0xd72   :  { %3556 = vmatprep.subr.mxu1 %v3669_v3 }
 0xd75   :  { %3557 = vmatpush3.xpose.msk.msra.mxu1 %vm202_vm0, %v4515_v17 }
 0xd76   :  { %3580 = vmatprep.subr.mxu1 %v3669_v3 }
 0xe21   :  { %v2648_v36 = vpop.f32.mrf.mxu0 }
 0xe22   :  { %v2649_v19 = vadd.f32 %v4523_v20, %v2648_v36 }
 0xe23   :  { %v3579_v14 = vpop.f32.mrf.mxu0 }
 0xe28   :  { %v2426_v22 = vpop.f32.mrf.mxu1 }
 0xe29   :  { %3559 = vmatmul.mubr.msk.f32.vlgmr.msra.gmra.mxu1 %vm202_vm0, %v2426_v22 }
 0xe2a   :  { %3581 = vmatpush3.xpose.msk.msra.mxu1 %vm202_vm0, %v2649_v19  ;;  %v3549_v15 = vpop.f32.mrf.mxu1  ;;  %3582 = vmatprep.mubr.msk.f32.mxu1 %vm3670_vm8, %v3669_v3 }
 0xe2b   :  { %3585 = vmatprep.subr.mxu1 %v3669_v3 }
 0xee9   :  { %v2522_v16 = vpop.f32.mrf.mxu1 }
 0xeea   :  { %v2523_v17 = vadd.f32 %v4534_v25, %v2522_v16 }
 0xeeb   :  { %v3560_v23 = vpop.f32.mrf.mxu1 }
 0xeec   :  { %3583 = vmatmul.mubr.msk.f32.vlgmr.msra.gmra.mxu1 %vm202_vm0, %v2523_v17 }
 0xeed   :  { %3587 = vmatprep.mubr.msk.f32.mxu1 %vm3670_vm8, %v3669_v3 }
 0xfac   :  { %v2724_v20 = vpop.f32.mrf.mxu1 }
 0xfad   :  { %v2728_v24 = vmul.f32 0.17677669, %v2724_v20 }
 0xfae   :  { %v3584_v27 = vpop.f32.mrf.mxu1 }
 0xfaf   :  { %v2729_v32 = vsel %vm2075_vm7, %v2728_v24, -inf }
 0xfb0   :  { %2730 = vmax.xlane.f32.xlu1 %v2729_v32 }
0x1039   :  { %v2731_v33 = vpop.xlane.xlu1 %2730 }
0x103a   :  { %v2732_v35 = vsub.f32 %v2728_v24, %v2731_v33 }
0x103c   :  { %v2733_v39 = vmul.f32 1.442695, %v2732_v35 }
0x103e   :  { %3621 = vpow2.f32 %v2733_v39 }
0x104b   :  { %v3622_v41 = vpop.eup %3621 }
0x104c   :  { %v2735_v42 = vsel %vm2075_vm7, %v3622_v41, 0.0 }
0x104d   :  { %2736 = vadd.xlane.f32.xlu0 %v2735_v42 }
0x1063   :  { %2740 = vrot.lane.b32.xlu0 %v2649_v19, %s3671_s2  ;;  %s3675_s2 = smov [#allocation4]  }
0x1064   :  { %s2929_s28 = sshll.u32 %s3675_s2, 4  ;;  %s2930_s28 = int_to_ptr.vmem [resolvable:$true] %s2929_s28 }
0x1065   :  { %s3625_s29 = scalar_lea.vmem %s2930_s28, 32  ;;  %p3630_p1 = scmp.lt.s32.totalorder %s2930_s28, %s2930_s28 }
0x1066   :  { %p3626_p0 = scmp.ne.s32.totalorder %s2930_s28, %s3625_s29  ;;  %p3631_p2 = scmp.lt.s32.totalorder %s3625_s29, %s3625_s29 }
0x1068   :  { %p3632_p3 = por %p3631_p2, %p3630_p1 }
0x106a   :  { %p3633_p4 = pnand %p3632_p3, %p3626_p0 }
0x10d6   :  { %v2737_v25 = vpop.xlane.xlu0 %2736 }
0x10d7   :  { %3623 = vrcp.f32 %v2737_v25 }
0x10da   :  { %v2741_v43 = vpop.permute.xlu0 %2740 }
0x10db   :  { %3586 = vmatpush3.msk.msra.mxu1 %vm2092_vm9, %v2741_v43 }
0x10dc   :  { %3590 = vmatprep.subr.mxu1 %v3669_v3 }
0x10e4   :  { %v3624_v44 = vpop.eup %3623 }
0x10e5   :  { %v2739_v45 = vmul.f32 %v3624_v44, %v3622_v41 }
0x10e7   :  { %3588 = vmatmul.mubr.msk.f32.vlgmr.msra.gmra.mxu1 %vm2075_vm7, %v2739_v45  ;;  %3092 = vst.msk [vmem:[%s4700_s23 + $0x8] sm:$0xff] %vm2075_vm7, %v2739_v45 }
0x10e8   :  { %3591 = vmatpush3.xpose.msk.msra.mxu1 %vm202_vm0, %v4550_v53  ;;  %3594 = vmatprep.mubr.msk.f32.mxu1 %vm3670_vm8, %v3669_v3 }
0x10e9   :  { %3592 = vmatprep.subr.mxu1 %v3669_v3 }
0x10ec   :  { %3593 = vmatpush3.xpose.msk.msra.mxu1 %vm202_vm0, %v4565_v54 }
0x11a7   :  { %v2813_v46 = vpop.f32.mrf.mxu1 }
0x11a8   :  { %3595 = vmatmul.mubr.msk.f32.vlgmr.msra.gmra.mxu1 %vm202_vm0, %v2813_v46 }
0x11a9   :  { %v3589_v47 = vpop.f32.mrf.mxu1 }
0x11aa   :  { %3636 = shalt.err (!%p3633_p4)
}
0x11ab   :  { %2932 = dma.vmem_to_hbm [thread:$0]  %s2930_s28, 32, %s4701_s24, [#allocation5]  }
0x11ac   :  { %s3676_s13 = smov [#allocation2]  }
0x11ad   :  { %s2914_s14 = sshll.u32 %s3676_s13, 4  ;;  %s2915_s14 = int_to_ptr.vmem [resolvable:$true] %s2914_s14 }
0x11ae   :  { %s3645_s18 = scalar_lea.vmem %s2915_s14, 256  ;;  %p3650_p6 = scmp.lt.s32.totalorder %s2915_s14, %s2915_s14 }
0x11af   :  { %p3646_p5 = scmp.ne.s32.totalorder %s2915_s14, %s3645_s18  ;;  %p3651_p7 = scmp.lt.s32.totalorder %s3645_s18, %s3645_s18 }
0x11b1   :  { %p3652_p8 = por %p3651_p7, %p3650_p6 }
0x11b3   :  { %p3653_p9 = pnand %p3652_p8, %p3646_p5 }
0x1268   :  { %v2901_v3 = vpop.f32.mrf.mxu1 }
0x1269   :  { %v2902_v48 = vadd.f32 %v4598_v28, %v2901_v3 }
0x126a   :  { %v3596_v38 = vpop.f32.mrf.mxu1 }
0x126b   :  { %2906 = vst.msk [vmem:[#allocation2 + $0x8] sm:$0xff] %vm109_vm3, %v2902_v48 }
0x126c   :  { %3656 = shalt.err (!%p3653_p9)
}
0x126d   :  { %s3677_s7 = smov 128   ;;  %s3678_s15 = smov 8  }
0x126e   :  { %2920 = dma.vmem_to_hbm [thread:$0]  %s2915_s14, 256, %s4699_s22, [#allocation3], %s3677_s7, %s3677_s7, %s3678_s15  }
0x126f   :  { %3665 = dma.done.wait [#allocation3], 256  }
0x1270   :  { %3666 = vsyncadd [#allocation3], 4294967040 }
0x1271   :  { %3667 = dma.done.wait [#allocation5], 32  }
0x1272   :  { %3668 = vsyncadd [#allocation5], 4294967264 }
0x1273   :  { %2941 = vsyncpa [#allocation3], 1 }
0x1274   :  { %2942 = vsyncpa [#allocation5], 1 }

</bundles_post_ra>
